<compile_context>
chip_gen: v5e
topology: v5e:2x2
jax: 0.10.0
libtpu: 0.0.40
codegen_flags: <defaults>
</compile_context>

<pallas_src>
import functools

import jax
import jax.numpy as jnp
from jax.experimental import pallas as pl
from jax.experimental.pallas import tpu as pltpu


def _round_up(x, m):
    return ((x + m - 1) // m) * m


def _conv_head_kernel(x_ref, *rest, n_depth):
    """Fused ConvHead forward for one (batch, spatial-tile) grid step.

    x_ref       : (1, Cin, TM) activation tile (channels x spatial pixels)
    rest[:-3]   : [w_d (Wtot, Cin|Wtot), shift_d (Wtot, 1)] * n_depth  (fused
                  across heads: d=0 vertically stacked, d>=1 block-diagonal)
    rest[-3]    : block-diagonal fused final weight (C_out_total, Wtot)
    rest[-2]    : fused final bias (C_out_total, 1), f32
    rest[-1]    : output ref (1, C_out_total, TM)
    """
    out_ref = rest[-1]
    b_fin_ref = rest[-2]
    w_fin_ref = rest[-3]
    layer_refs = rest[:-3]

    h = x_ref[0]                         # (Cin, TM), streaming dtype
    compute_dtype = h.dtype
    for d in range(n_depth):             # python-unrolled: static structure
        w = layer_refs[2 * d][...]       # BN scale pre-folded
        shift = layer_refs[2 * d + 1][...]
        acc = jnp.dot(w, h, preferred_element_type=jnp.float32)   # MXU
        h = jnp.maximum(acc + shift, 0.0).astype(compute_dtype)   # f32 epilogue

    # One lane-dense matmul emits the channel-concatenated output tile.
    y = jnp.dot(w_fin_ref[...], h, preferred_element_type=jnp.float32)
    y = y + b_fin_ref[...]
    out_ref[0] = y.astype(out_ref.dtype)


def conv_head_forward(x, head_params, *, bn_eps=1e-5, stream_dtype=None,
                      interpret=False):
    """Fused ConvHead forward.

    Args:
      x: (B, Cin, H, W) NCHW activation.
      head_params: ordered list (one entry per task head) of dicts:
          {"hidden": [(w (Chid, Cin_l), gamma, beta, running_mean, running_var), ...],
           "final":  (w (ncls, Chid), b (ncls,))}
      bn_eps: BatchNorm epsilon.
      stream_dtype: dtype used for the HBM activation stream and the MXU
          operands (e.g. jnp.bfloat16 for the bandwidth-bound fast path on
          v6e/v7x). Default: x.dtype. Accumulation/epilogue stay f32; output
          keeps the caller's dtype.

    Returns:
      (B, sum(ncls), H, W) — heads concatenated on the channel axis (NCHW),
      matching the PyTorch module (inference-mode BN).
    """
    B, c_in, H, W = x.shape
    hw = H * W
    out_dtype = x.dtype
    stream_dtype = jnp.dtype(stream_dtype if stream_dtype is not None else out_dtype)

    # ---------------- fold BN + fuse heads (trace time) ----------------------
    widths, ncls_list, depths = [], [], []
    for hp in head_params:
        n_hidden = len(hp["hidden"])
        assert n_hidden >= 1, (
            "fused ConvHead kernel requires head_dims >= 2 "
            "(at least one hidden Conv-BN-ReLU per head)")
        depths.append(n_hidden)
        w0 = hp["hidden"][0][0]
        assert int(w0.shape[1]) == c_in, "first hidden conv must map Cin -> Chid"
        widths.append(int(w0.shape[0]))
        for (w, *_bn) in hp["hidden"][1:]:
            assert tuple(w.shape) == (widths[-1], widths[-1]), (
                "stacked hidden convs must map width -> width (module constraint)")
        ncls_list.append(int(hp["final"][0].shape[0]))
    w_total = int(sum(widths))
    c_out = int(sum(ncls_list))
    max_depth = max(depths)
    col_offs = [0]
    for wdt in widths:
        col_offs.append(col_offs[-1] + wdt)

    def fold(layer):
        w, gamma, beta, mean, var = layer
        scale = gamma.astype(jnp.float32) / jnp.sqrt(var.astype(jnp.float32) + bn_eps)
        wf = w.astype(jnp.float32) * scale[:, None]
        shift = beta.astype(jnp.float32) - mean.astype(jnp.float32) * scale
        return wf, shift

    layer_params = []
    # Depth 0: every head reads the same x -> exact vertical stack, one matmul.
    w0s, s0s = [], []
    for hp in head_params:
        wf, sf = fold(hp["hidden"][0])
        w0s.append(wf)
        s0s.append(sf)
    layer_params.append(jnp.concatenate(w0s, axis=0).astype(stream_dtype))
    layer_params.append(jnp.concatenate(s0s, axis=0).reshape(-1, 1).astype(jnp.float32))

    # Depth >= 1: block-diagonal across heads; exhausted heads get an identity
    # block + zero shift (exact: their activations are post-ReLU >= 0).
    for d in range(1, max_depth):
        wd = jnp.zeros((w_total, w_total), jnp.float32)
        sd = jnp.zeros((w_total,), jnp.float32)
        for h_idx, hp in enumerate(head_params):
            r0, r1 = col_offs[h_idx], col_offs[h_idx + 1]
            if d < depths[h_idx]:
                wf, sf = fold(hp["hidden"][d])
                wd = wd.at[r0:r1, r0:r1].set(wf)
                sd = sd.at[r0:r1].set(sf)
            else:
                wd = wd.at[r0:r1, r0:r1].set(jnp.eye(r1 - r0, dtype=jnp.float32))
        layer_params.append(wd.astype(stream_dtype))
        layer_params.append(sd.reshape(-1, 1).astype(jnp.float32))

    # Fused final 1x1 conv: block-diagonal -> emits pre-concatenated channels.
    w_fin = jnp.zeros((c_out, w_total), jnp.float32)
    b_fin = jnp.zeros((c_out,), jnp.float32)
    r = 0
    for h_idx, hp in enumerate(head_params):
        wf, bf = hp["final"]
        n = int(wf.shape[0])
        w_fin = w_fin.at[r:r + n, col_offs[h_idx]:col_offs[h_idx + 1]].set(
            wf.astype(jnp.float32))
        b_fin = b_fin.at[r:r + n].set(bf.astype(jnp.float32))
        r += n
    flat_params = layer_params + [w_fin.astype(stream_dtype),
                                  b_fin.reshape(-1, 1).astype(jnp.float32)]

    # ---------------- tile sizing from the VMEM budget -----------------------
    itm_s = jnp.dtype(stream_dtype).itemsize
    itm_o = jnp.dtype(out_dtype).itemsize
    param_bytes = sum(int(p.size) * jnp.dtype(p.dtype).itemsize for p in flat_params)

    try:
        phys_vmem = int(pltpu.get_tpu_info().vmem_capacity_bytes)
    except Exception:
        phys_vmem = 64 * 1024 * 1024          # v7x-safe fallback
    vmem_budget = int(phys_vmem * 0.72)       # headroom for Mosaic scratch

    n_in_buf, n_out_buf = 3, 2                # Buffered(3) input, default output
    per_lane = (n_in_buf * c_in * itm_s
                + n_out_buf * c_out * itm_o
                + w_total * (itm_s + 4)       # hidden activation + f32 accumulator
                + c_out * 4)                  # final f32 accumulator
    tm_target = (vmem_budget - 2 * param_bytes) // per_lane
    tm_target = max(128, min(8192, (tm_target // 128) * 128))

    n_m = max(1, pl.cdiv(hw, tm_target))
    # v7x megacore: keep >= 2 parallel grid steps so both TensorCores get work.
    if B * n_m < 2 and hw > 128:
        n_m = 2
    tm = _round_up(pl.cdiv(hw, n_m), 128)
    hw_pad = n_m * tm

    x3 = x.reshape(B, c_in, hw)               # metadata-only on NCHW
    if stream_dtype != x.dtype:
        x3 = x3.astype(stream_dtype)
    if hw_pad != hw:
        x3 = jnp.pad(x3, ((0, 0), (0, 0), (0, hw_pad - hw)))
    grid = (B, n_m)

    # ---------------- specs / cost / call ------------------------------------
    def _build_specs(use_pipeline_hints):
        if use_pipeline_hints:
            x_spec = pl.BlockSpec((1, c_in, tm), lambda b, m: (b, 0, m),
                                  pipeline_mode=pl.Buffered(3))
            prm_specs = [pl.BlockSpec(p.shape,
                                      lambda b, m, nd=p.ndim: (0,) * nd,
                                      pipeline_mode=pl.Buffered(1))
                         for p in flat_params]
        else:
            x_spec = pl.BlockSpec((1, c_in, tm), lambda b, m: (b, 0, m))
            prm_specs = [pl.BlockSpec(p.shape,
                                      lambda b, m, nd=p.ndim: (0,) * nd)
                         for p in flat_params]
        out_spec = pl.BlockSpec((1, c_out, tm), lambda b, m: (b, 0, m))
        return [x_spec] + prm_specs, out_spec

    mm_flops = w_total * c_in + (max_depth - 1) * w_total * w_total + c_out * w_total
    cost = pl.CostEstimate(
        flops=2 * B * hw_pad * mm_flops,
        transcendentals=0,
        bytes_accessed=B * hw_pad * (c_in * itm_s + c_out * itm_o) + param_bytes)

    kernel = functools.partial(_conv_head_kernel, n_depth=max_depth)

    def _run(use_pipeline_hints):
        in_specs, out_spec = _build_specs(use_pipeline_hints)
        return pl.pallas_call(
            kernel,
            out_shape=jax.ShapeDtypeStruct((B, c_out, hw_pad), out_dtype),
            grid=grid,
            in_specs=in_specs,
            out_specs=out_spec,
            compiler_params=pltpu.CompilerParams(
                dimension_semantics=("parallel", "parallel"),
                vmem_limit_bytes=vmem_budget),
            cost_estimate=cost,
            interpret=interpret,
        )(x3, *flat_params)

    try:
        out = _run(True)
    except Exception:
        # Fall back to default double-buffering if pipeline hints are rejected.
        out = _run(False)

    if hw_pad != hw:
        out = out[:, :, :hw]
    return out.reshape(B, c_out, H, W)


def conv_head_reference(x, head_params, bn_eps=1e-5):
    """Pure-JAX reference matching the PyTorch ConvHead forward (inference BN)."""
    xf = x.astype(jnp.float32)
    outs = []
    for hp in head_params:
        h = xf
        for (w, gamma, beta, mean, var) in hp["hidden"]:
            h = jnp.einsum("oc,bchw->bohw", w.astype(jnp.float32), h)
            scale = (gamma / jnp.sqrt(var + bn_eps)).astype(jnp.float32)
            shift = (beta - mean * scale).astype(jnp.float32)
            h = h * scale[None, :, None, None] + shift[None, :, None, None]
            h = jnp.maximum(h, 0.0)
        w_f, b_f = hp["final"]
        y = jnp.einsum("oc,bchw->bohw", w_f.astype(jnp.float32), h)
        y = y + b_f.astype(jnp.float32)[None, :, None, None]
        outs.append(y)
    return jnp.concatenate(outs, axis=1).astype(x.dtype)


if __name__ == "__main__":
    key = jax.random.PRNGKey(0)

    # CenterPoint-style head config: name -> (ncls, head_dims).
    # "rot" uses head_dims=3 to exercise the block-diagonal deep-layer fusion.
    heads = {"heatmap": (2, 2), "reg": (2, 2), "dim": (3, 2), "rot": (2, 3)}
    B, c_in, H, W = 2, 32, 16, 16
    c_hidden = 64   # == out_channels in the PyTorch module

    head_params = []
    for _name, (ncls, head_dims) in heads.items():
        hidden = []
        for layer_idx in range(head_dims - 1):
            key, k1, k2, k3, k4, k5 = jax.random.split(key, 6)
            cin_l = c_in if layer_idx == 0 else c_hidden
            w = 0.1 * jax.random.normal(k1, (c_hidden, cin_l), jnp.float32)
            gamma = 1.0 + 0.1 * jax.random.normal(k2, (c_hidden,), jnp.float32)
            beta = 0.1 * jax.random.normal(k3, (c_hidden,), jnp.float32)
            mean = 0.1 * jax.random.normal(k4, (c_hidden,), jnp.float32)
            var = 0.5 + jax.random.uniform(k5, (c_hidden,), jnp.float32)
            hidden.append((w, gamma, beta, mean, var))
        key, k1, k2 = jax.random.split(key, 3)
        w_f = 0.1 * jax.random.normal(k1, (ncls, c_hidden), jnp.float32)
        b_f = 0.1 * jax.random.normal(k2, (ncls,), jnp.float32)
        head_params.append({"hidden": hidden, "final": (w_f, b_f)})

    key, kx = jax.random.split(key)
    x = jax.random.normal(kx, (B, c_in, H, W), jnp.float32)

    ref = conv_head_reference(x, head_params)

    # f32 end-to-end path.
    out = jax.block_until_ready(conv_head_forward(x, head_params))
    assert out.shape == ref.shape, (out.shape, ref.shape)
    err = float(jnp.max(jnp.abs(out.astype(jnp.float32) - ref.astype(jnp.float32))))
    assert jnp.allclose(out, ref, rtol=1e-2, atol=1e-2), err

    # bf16 streaming fast path (mem-bound win on v5e/v6e/v7x); f32 epilogue.
    out_bf = jax.block_until_ready(
        conv_head_forward(x, head_params, stream_dtype=jnp.bfloat16))
    assert out_bf.shape == ref.shape
    err_bf = float(jnp.max(jnp.abs(out_bf.astype(jnp.float32) - ref.astype(jnp.float32))))
    assert jnp.allclose(out_bf.astype(jnp.float32), ref.astype(jnp.float32),
                        rtol=5e-2, atol=5e-2), err_bf

    print("KERNEL_OK")
</pallas_src>

<mosaic_0001>
module attributes {stable_mosaic.version = 11 : i64} {
  func.func @_conv_head_kernel(%arg0: i32, %arg1: i32, %arg2: memref<1x32x256xf32, #tpu.memory_space<vmem>>, %arg3: memref<256x32xf32, #tpu.memory_space<vmem>>, %arg4: memref<256x1xf32, #tpu.memory_space<vmem>>, %arg5: memref<256x256xf32, #tpu.memory_space<vmem>>, %arg6: memref<256x1xf32, #tpu.memory_space<vmem>>, %arg7: memref<9x256xf32, #tpu.memory_space<vmem>>, %arg8: memref<9x1xf32, #tpu.memory_space<vmem>>, %arg9: memref<1x9x256xf32, #tpu.memory_space<vmem>>) attributes {dimension_semantics = [#tpu.dimension_semantics<parallel>, #tpu.dimension_semantics<parallel>], iteration_bounds = array<i64: 2, 1>, scalar_prefetch = 0 : i64, scratch_operands = 0 : i64, tpu.core_type = #tpu.core_type<tc>, window_params = [{transform_indices = @transform_0, window_bounds = array<i64: 1, 32, 256>}, {pipeline_mode = #tpu.pipeline_mode<synchronous>, transform_indices = @transform_1, window_bounds = array<i64: 256, 32>}, {pipeline_mode = #tpu.pipeline_mode<synchronous>, transform_indices = @transform_2, window_bounds = array<i64: 256, 1>}, {pipeline_mode = #tpu.pipeline_mode<synchronous>, transform_indices = @transform_3, window_bounds = array<i64: 256, 256>}, {pipeline_mode = #tpu.pipeline_mode<synchronous>, transform_indices = @transform_4, window_bounds = array<i64: 256, 1>}, {pipeline_mode = #tpu.pipeline_mode<synchronous>, transform_indices = @transform_5, window_bounds = array<i64: 9, 256>}, {pipeline_mode = #tpu.pipeline_mode<synchronous>, transform_indices = @transform_6, window_bounds = array<i64: 9, 1>}, {transform_indices = @transform_7, window_bounds = array<i64: 1, 9, 256>}]} {
    %c0 = arith.constant 0 : index
    %c0_0 = arith.constant 0 : index
    %c0_1 = arith.constant 0 : index
    %0 = vector.load %arg2[%c0, %c0_0, %c0_1] : memref<1x32x256xf32, #tpu.memory_space<vmem>>, vector<1x32x256xf32>
    %1 = vector.shape_cast %0 : vector<1x32x256xf32> to vector<32x256xf32>
    %c0_2 = arith.constant 0 : index
    %c0_3 = arith.constant 0 : index
    %2 = vector.load %arg3[%c0_2, %c0_3] : memref<256x32xf32, #tpu.memory_space<vmem>>, vector<256x32xf32>
    %c0_4 = arith.constant 0 : index
    %c0_5 = arith.constant 0 : index
    %3 = vector.load %arg4[%c0_4, %c0_5] : memref<256x1xf32, #tpu.memory_space<vmem>>, vector<256x1xf32>
    %cst = arith.constant dense<0.000000e+00> : vector<256x256xf32>
    %4 = tpu.matmul %2, %1, %cst {dimension_numbers = #tpu.dot_dimension_numbers<[1], [0], [0], [1], [0, 0, 1, 1], [], []>} : vector<256x32xf32>, vector<32x256xf32>, vector<256x256xf32> -> vector<256x256xf32>
    %5 = vector.broadcast %3 : vector<256x1xf32> to vector<256x256xf32>
    %6 = arith.addf %4, %5 : vector<256x256xf32>
    %cst_6 = arith.constant 0.000000e+00 : f32
    %7 = vector.broadcast %cst_6 : f32 to vector<256x256xf32>
    %8 = arith.maximumf %6, %7 : vector<256x256xf32>
    %c0_7 = arith.constant 0 : index
    %c0_8 = arith.constant 0 : index
    %9 = vector.load %arg5[%c0_7, %c0_8] : memref<256x256xf32, #tpu.memory_space<vmem>>, vector<256x256xf32>
    %c0_9 = arith.constant 0 : index
    %c0_10 = arith.constant 0 : index
    %10 = vector.load %arg6[%c0_9, %c0_10] : memref<256x1xf32, #tpu.memory_space<vmem>>, vector<256x1xf32>
    %cst_11 = arith.constant dense<0.000000e+00> : vector<256x256xf32>
    %11 = tpu.matmul %9, %8, %cst_11 {dimension_numbers = #tpu.dot_dimension_numbers<[1], [0], [0], [1], [0, 0, 1, 1], [], []>} : vector<256x256xf32>, vector<256x256xf32>, vector<256x256xf32> -> vector<256x256xf32>
    %12 = vector.broadcast %10 : vector<256x1xf32> to vector<256x256xf32>
    %13 = arith.addf %11, %12 : vector<256x256xf32>
    %cst_12 = arith.constant 0.000000e+00 : f32
    %14 = vector.broadcast %cst_12 : f32 to vector<256x256xf32>
    %15 = arith.maximumf %13, %14 : vector<256x256xf32>
    %c0_13 = arith.constant 0 : index
    %c0_14 = arith.constant 0 : index
    %16 = vector.load %arg7[%c0_13, %c0_14] : memref<9x256xf32, #tpu.memory_space<vmem>>, vector<9x256xf32>
    %cst_15 = arith.constant dense<0.000000e+00> : vector<9x256xf32>
    %17 = tpu.matmul %16, %15, %cst_15 {dimension_numbers = #tpu.dot_dimension_numbers<[1], [0], [0], [1], [0, 0, 1, 1], [], []>} : vector<9x256xf32>, vector<256x256xf32>, vector<9x256xf32> -> vector<9x256xf32>
    %c0_16 = arith.constant 0 : index
    %c0_17 = arith.constant 0 : index
    %18 = vector.load %arg8[%c0_16, %c0_17] : memref<9x1xf32, #tpu.memory_space<vmem>>, vector<9x1xf32>
    %19 = vector.broadcast %18 : vector<9x1xf32> to vector<9x256xf32>
    %20 = arith.addf %17, %19 : vector<9x256xf32>
    %c0_18 = arith.constant 0 : index
    %c0_19 = arith.constant 0 : index
    %c0_20 = arith.constant 0 : index
    %21 = vector.load %arg9[%c0_18, %c0_19, %c0_20] : memref<1x9x256xf32, #tpu.memory_space<vmem>>, vector<1x9x256xf32>
    %22 = vector.shape_cast %21 : vector<1x9x256xf32> to vector<9x256xf32>
    %23 = vector.shape_cast %20 : vector<9x256xf32> to vector<1x9x256xf32>
    tpu.vector_store %arg9[%c0_18, %c0_19, %c0_20], %23 {strides = array<i32>} : memref<1x9x256xf32, #tpu.memory_space<vmem>>, vector<1x9x256xf32>,
    return
  }
  func.func @transform_0(%arg0: i32, %arg1: i32) -> (i32, i32, i32) {
    %c0_i32 = arith.constant 0 : i32
    %c0_i32_0 = arith.constant 0 : i32
    return %arg0, %c0_i32, %arg1 : i32, i32, i32
  }
  func.func @transform_1(%arg0: i32, %arg1: i32) -> (i32, i32) {
    %c0_i32 = arith.constant 0 : i32
    %c0_i32_0 = arith.constant 0 : i32
    %c0_i32_1 = arith.constant 0 : i32
    return %c0_i32, %c0_i32_0 : i32, i32
  }
  func.func @transform_2(%arg0: i32, %arg1: i32) -> (i32, i32) {
    %c0_i32 = arith.constant 0 : i32
    %c0_i32_0 = arith.constant 0 : i32
    %c0_i32_1 = arith.constant 0 : i32
    return %c0_i32, %c0_i32_0 : i32, i32
  }
  func.func @transform_3(%arg0: i32, %arg1: i32) -> (i32, i32) {
    %c0_i32 = arith.constant 0 : i32
    %c0_i32_0 = arith.constant 0 : i32
    %c0_i32_1 = arith.constant 0 : i32
    return %c0_i32, %c0_i32_0 : i32, i32
  }
  func.func @transform_4(%arg0: i32, %arg1: i32) -> (i32, i32) {
    %c0_i32 = arith.constant 0 : i32
    %c0_i32_0 = arith.constant 0 : i32
    %c0_i32_1 = arith.constant 0 : i32
    return %c0_i32, %c0_i32_0 : i32, i32
  }
  func.func @transform_5(%arg0: i32, %arg1: i32) -> (i32, i32) {
    %c0_i32 = arith.constant 0 : i32
    %c0_i32_0 = arith.constant 0 : i32
    %c0_i32_1 = arith.constant 0 : i32
    return %c0_i32, %c0_i32_0 : i32, i32
  }
  func.func @transform_6(%arg0: i32, %arg1: i32) -> (i32, i32) {
    %c0_i32 = arith.constant 0 : i32
    %c0_i32_0 = arith.constant 0 : i32
    %c0_i32_1 = arith.constant 0 : i32
    return %c0_i32, %c0_i32_0 : i32, i32
  }
  func.func @transform_7(%arg0: i32, %arg1: i32) -> (i32, i32, i32) {
    %c0_i32 = arith.constant 0 : i32
    %c0_i32_0 = arith.constant 0 : i32
    return %arg0, %c0_i32, %arg1 : i32, i32, i32
  }
}

</mosaic_0001>

<bundles_post_ra>
// kernel: tpu_custom_call.1
= control target key start
LH: loop header
LB: loop body
LE: loop exit
PB: predicated region body
PF: predicated region fallthrough
CT: control target
= control target key end

     0   :  { %s2086_s24 = smov 0   ;;  %s2088_s25 = smov 0   ;;  %s3242_s0 = inlined_call_operand.vmem [shape: f32[2,32,256], index: 0, kind: input, shape index: {}]   ;;  %s3243_s1 = inlined_call_operand.vmem [shape: f32[256,32], index: 1, kind: input, shape index: {}]   ;;  %s3244_s2 = inlined_call_operand.vmem [shape: f32[256,1], index: 2, kind: input, shape index: {}]   ;;  %s3245_s3 = inlined_call_operand.vmem [shape: f32[256,256], index: 3, kind: input, shape index: {}]   ;;  %s3246_s4 = inlined_call_operand.vmem [shape: f32[256,1], index: 4, kind: input, shape index: {}]   ;;  %s3247_s5 = inlined_call_operand.vmem [shape: f32[9,256], index: 5, kind: input, shape index: {}]   ;;  %s3248_s6 = inlined_call_operand.vmem [shape: f32[9,1], index: 6, kind: input, shape index: {}]   ;;  %s3249_s7 = inlined_call_operand.vmem [shape: f32[2,9,256], index: 7, kind: output, shape index: {}]  }
   0x1   :  { %s2090_s26 = smov 0  }
   0x2 LB: > { %s29_s27 = sadd.s32 1, %s2039_s25  ;;  %p1912_p0 = scmp.ge.s32.totalorder %s2043_s26, 1  ;;  %s2043_s26 = sphi %s2090_s26, %s17_s26   ;;  %s2039_s25 = sphi %s2088_s25, %s3383_s25   ;;  %s2035_s24 = sphi %s2086_s24, %s3382_s24  }
   0x3   : > { %p31_p1 = scmp.ge.s32.totalorder %s29_s27, 2  ;;  %p258_p2 = scmp.lt.s32.totalorder %s2043_s26, 3 }
   0x5   : > { %s3385_s27 = smov (%p31_p1, %s29_s27), 0  ;;  %p259_p3 = pnand %p1912_p0, %p258_p2 }
   0x7   : > { %262 = sbr.rel (%p259_p3) target bundleno = 906 (0x38a), region = 48 }
   0xc   : > { %v389_v0 = vld [vmem:[%s3244_s2 + $0xf8] sm:$0xff]  ;;  %v388_v1 = vld [vmem:[%s3244_s2 + $0xf0] sm:$0xff]  ;;  %p299_p4 = scmp.lt.s32.totalorder %s2035_s24, 1  ;;  %v2045_v3 = vmov 0   ;;  %v371_v9 = vld [vmem:[%s3244_s2 + $0x68] sm:$0xff]  ;;  %vm550_vm0 = vcmask 261120  }
   0xd   : > { %v373_v2 = vld [vmem:[%s3244_s2 + $0x78] sm:$0xff]  ;;  %2020 = vset.pattern.permute.xlu2 %v2045_v3  ;;  %2019 = vset.pattern.permute.xlu1 %v2045_v3  ;;  %v372_v8 = vld [vmem:[%s3244_s2 + $0x70] sm:$0xff]  ;;  %v370_v10 = vld [vmem:[%s3244_s2 + $0x60] sm:$0xff] }
   0xe   : > { %2018 = vset.pattern.permute.xlu0 %v2045_v3  ;;  %547 = vperm.xlu1 %2019, %v389_v0   ;;  %s3387_s24 = smov (!%p299_p4, %s2035_s24), 1  ;;  %v326_v15 = vld [vmem:[%s3243_s1] sm:$0xff]  ;;  %v2137_v17 = vld [vmem:[%s3243_s1 + $0x98] sm:$0xff]  ;;  %v387_v18 = vld [vmem:[%s3244_s2 + $0xe8] sm:$0xff] }
   0xf   : > { %542 = vperm.xlu2 %2020, %v388_v1   ;;  %467 = vperm.xlu0 %2018, %v373_v2   ;;  %s1983_s11 = sshll.u32 %s3387_s24, 6  ;;  %v346_v16 = vld [vmem:[%s3243_s1 + $0xa0] sm:$0xff]  ;;  %v369_v19 = vld [vmem:[%s3244_s2 + $0x58] sm:$0xff]  ;;  %v327_v21 = vld [vmem:[%s3243_s1 + $0x8] sm:$0xff]  ;;  %s1984_s18 = sshll.u32 %s3387_s24, 5 }
  0x10   : > { %s306_s14 = scalar_lea.vmem %s3242_s0, %s1983_s11  ;;  %v386_v20 = vld [vmem:[%s3244_s2 + $0xe0] sm:$0xff]  ;;  %v347_v22 = vld [vmem:[%s3243_s1 + $0xa8] sm:$0xff]  ;;  %v385_v23 = vld [vmem:[%s3244_s2 + $0xd8] sm:$0xff]  ;;  %s316_s21 = scalar_lea.vmem %s3249_s7, %s1984_s18 }
  0x11   : > { %v324_v4 = vld [vmem:[%s306_s14 + $0x30] sm:$0xff]  ;;  %v325_v5 = vld [vmem:[%s306_s14 + $0x38] sm:$0xff]  ;;  %v322_v6 = vld [vmem:[%s306_s14 + $0x20] sm:$0xff] }
  0x12   : > { %659 = vmatpush.msra.mxu0 %v324_v4  ;;  %1985 = vmatpush.msra.mxu2 %v324_v4  ;;  %v323_v7 = vld [vmem:[%s306_s14 + $0x28] sm:$0xff]  ;;  %v320_v11 = vld [vmem:[%s306_s14 + $0x10] sm:$0xff]  ;;  %v321_v12 = vld [vmem:[%s306_s14 + $0x18] sm:$0xff] }
  0x13   : > { %772 = vmatpush.msra.mxu1 %v325_v5  ;;  %1989 = vmatpush.msra.mxu3 %v325_v5  ;;  %v318_v13 = vld [vmem:[%s306_s14] sm:$0xff]  ;;  %v319_v14 = vld [vmem:[%s306_s14 + $0x8] sm:$0xff]  ;;  %v368_v24 = vld [vmem:[%s3244_s2 + $0x50] sm:$0xff] }
  0x14   : > { %660 = vmatpush.msra.mxu0 %v322_v6  ;;  %1986 = vmatpush.msra.mxu2 %v322_v6  ;;  %v367_v25 = vld [vmem:[%s3244_s2 + $0x48] sm:$0xff]  ;;  %v328_v26 = vld [vmem:[%s3243_s1 + $0x10] sm:$0xff]  ;;  %v366_v29 = vld [vmem:[%s3244_s2 + $0x40] sm:$0xff] }
  0x15   : > { %773 = vmatpush.msra.mxu1 %v323_v7  ;;  %1990 = vmatpush.msra.mxu3 %v323_v7  ;;  %v348_v27 = vld [vmem:[%s3243_s1 + $0xb0] sm:$0xff]  ;;  %v383_v30 = vld [vmem:[%s3244_s2 + $0xc8] sm:$0xff]  ;;  %v329_v31 = vld [vmem:[%s3243_s1 + $0x18] sm:$0xff] }
  0x16   : > { %457 = vperm.xlu1 %2019, %v371_v9   ;;  %661 = vmatpush.msra.mxu0 %v320_v11  ;;  %v384_v28 = vld [vmem:[%s3244_s2 + $0xd0] sm:$0xff]  ;;  %v349_v32 = vld [vmem:[%s3243_s1 + $0xb8] sm:$0xff]  ;;  %v382_v33 = vld [vmem:[%s3244_s2 + $0xc0] sm:$0xff] }
  0x17   : > { %462 = vperm.xlu0 %2018, %v372_v8   ;;  %452 = vperm.xlu2 %2020, %v370_v10   ;;  %v365_v34 = vld [vmem:[%s3244_s2 + $0x38] sm:$0xff]  ;;  %v364_v35 = vld [vmem:[%s3244_s2 + $0x30] sm:$0xff]  ;;  %v330_v36 = vld [vmem:[%s3243_s1 + $0x20] sm:$0xff] }
  0x18   : > { %1987 = vmatpush.msra.mxu2 %v320_v11  ;;  %774 = vmatpush.msra.mxu1 %v321_v12  ;;  %v350_v37 = vld [vmem:[%s3243_s1 + $0xc0] sm:$0xff]  ;;  %v381_v38 = vld [vmem:[%s3244_s2 + $0xb8] sm:$0xff]  ;;  %v363_v39 = vld [vmem:[%s3244_s2 + $0x28] sm:$0xff] }
  0x19   : > { %1991 = vmatpush.msra.mxu3 %v321_v12  ;;  %662 = vmatpush.msra.mxu0 %v318_v13  ;;  %v380_v40 = vld [vmem:[%s3244_s2 + $0xb0] sm:$0xff]  ;;  %v331_v41 = vld [vmem:[%s3243_s1 + $0x28] sm:$0xff]  ;;  %v362_v44 = vld [vmem:[%s3244_s2 + $0x20] sm:$0xff] }
  0x1a   : > { %1988 = vmatpush.msra.mxu2 %v318_v13  ;;  %775 = vmatpush.msra.mxu1 %v319_v14  ;;  %v351_v42 = vld [vmem:[%s3243_s1 + $0xc8] sm:$0xff]  ;;  %v361_v45 = vld [vmem:[%s3244_s2 + $0x18] sm:$0xff]  ;;  %v332_v46 = vld [vmem:[%s3243_s1 + $0x30] sm:$0xff] }
  0x1b   : > { %1992 = vmatpush.msra.mxu3 %v319_v14  ;;  %1917 = vmatmul.msk.f32.vlgmr.msra.gmra.mxu0 %vm550_vm0, %v326_v15  ;;  %v379_v43 = vld [vmem:[%s3244_s2 + $0xa8] sm:$0xff]  ;;  %v352_v47 = vld [vmem:[%s3243_s1 + $0xd0] sm:$0xff]  ;;  %v378_v48 = vld [vmem:[%s3244_s2 + $0xa0] sm:$0xff] }
  0x1c   : > { %1937 = vmatmul.msk.f32.vlgmr.msra.gmra.mxu2 %vm550_vm0, %v346_v16  ;;  %1949 = vmatmul.msk.f32.vlgmr.msra.gmra.mxu1 %vm550_vm0, %v326_v15  ;;  %v360_v49 = vld [vmem:[%s3244_s2 + $0x10] sm:$0xff]  ;;  %v377_v50 = vld [vmem:[%s3244_s2 + $0x98] sm:$0xff]  ;;  %v359_v54 = vld [vmem:[%s3244_s2 + $0x8] sm:$0xff] }
  0x1d   : > { %1968 = vmatmul.msk.f32.vlgmr.msra.gmra.mxu3 %vm550_vm0, %v2137_v17  ;;  %v333_v51 = vld [vmem:[%s3243_s1 + $0x38] sm:$0xff]  ;;  %v376_v53 = vld [vmem:[%s3244_s2 + $0x90] sm:$0xff]  ;;  %v358_v55 = vld [vmem:[%s3244_s2] sm:$0xff] }
  0x1e   : > { %447 = vperm.xlu1 %2019, %v369_v19   ;;  %v353_v52 = vld [vmem:[%s3243_s1 + $0xd8] sm:$0xff]  ;;  %v334_v56 = vld [vmem:[%s3243_s1 + $0x40] sm:$0xff]  ;;  %v375_v59 = vld [vmem:[%s3244_s2 + $0x88] sm:$0xff] }
  0x1f   : > { %537 = vperm.xlu0 %2018, %v387_v18   ;;  %532 = vperm.xlu2 %2020, %v386_v20   ;;  %v354_v57 = vld [vmem:[%s3243_s1 + $0xe0] sm:$0xff]  ;;  %v1016_v60 = vld [vmem:[%s3246_s4 + $0x78] sm:$0xff]  ;;  %v335_v61 = vld [vmem:[%s3243_s1 + $0x48] sm:$0xff] }
  0x20   : > { %v374_v58 = vld [vmem:[%s3244_s2 + $0x80] sm:$0xff]  ;;  %v355_v62 = vld [vmem:[%s3243_s1 + $0xe8] sm:$0xff]  ;;  %v1032_v63 = vld [vmem:[%s3246_s4 + $0xf8] sm:$0xff] }
  0x21   : > { %v1015_v0 = vld [vmem:[%s3246_s4 + $0x70] sm:$0xff]  ;;  %v1014_v1 = vld [vmem:[%s3246_s4 + $0x68] sm:$0xff]  ;;  %v1013_v4 = vld [vmem:[%s3246_s4 + $0x60] sm:$0xff] }
  0x22   : > { %v336_v2 = vld [vmem:[%s3243_s1 + $0x50] sm:$0xff]  ;;  %v1030_v6 = vld [vmem:[%s3246_s4 + $0xe8] sm:$0xff]  ;;  %v337_v7 = vld [vmem:[%s3243_s1 + $0x58] sm:$0xff] }
  0x23   : > { %1918 = vmatmul.msk.f32.gmra.mxu0 %vm550_vm0, %v327_v21  ;;  %v356_v3 = vld [vmem:[%s3243_s1 + $0xf0] sm:$0xff]  ;;  %v357_v8 = vld [vmem:[%s3243_s1 + $0xf8] sm:$0xff]  ;;  %v1029_v9 = vld [vmem:[%s3246_s4 + $0xe0] sm:$0xff] }
  0x24   : > { %1938 = vmatmul.msk.f32.gmra.mxu2 %vm550_vm0, %v347_v22  ;;  %1950 = vmatmul.msk.f32.gmra.mxu1 %vm550_vm0, %v327_v21  ;;  %v1031_v5 = vld [vmem:[%s3246_s4 + $0xf0] sm:$0xff]  ;;  %v1012_v10 = vld [vmem:[%s3246_s4 + $0x58] sm:$0xff]  ;;  %v338_v12 = vld [vmem:[%s3243_s1 + $0x60] sm:$0xff] }
  0x25   : > { %1969 = vmatmul.msk.f32.gmra.mxu3 %vm550_vm0, %v346_v16  ;;  %v1011_v11 = vld [vmem:[%s3246_s4 + $0x50] sm:$0xff]  ;;  %v1010_v13 = vld [vmem:[%s3246_s4 + $0x48] sm:$0xff]  ;;  %v1028_v14 = vld [vmem:[%s3246_s4 + $0xd8] sm:$0xff] }
  0x26   : > { %527 = vperm.xlu1 %2019, %v385_v23   ;;  %v1027_v15 = vld [vmem:[%s3246_s4 + $0xd0] sm:$0xff]  ;;  %v339_v16 = vld [vmem:[%s3243_s1 + $0x68] sm:$0xff]  ;;  %v1009_v19 = vld [vmem:[%s3246_s4 + $0x40] sm:$0xff] }
  0x27   : > { %442 = vperm.xlu0 %2018, %v368_v24   ;;  %437 = vperm.xlu2 %2020, %v367_v25   ;;  %v1026_v18 = vld [vmem:[%s3246_s4 + $0xc8] sm:$0xff]  ;;  %v1008_v20 = vld [vmem:[%s3246_s4 + $0x38] sm:$0xff]  ;;  %v340_v21 = vld [vmem:[%s3243_s1 + $0x70] sm:$0xff] }
  0x28   : > { %v1025_v23 = vld [vmem:[%s3246_s4 + $0xc0] sm:$0xff]  ;;  %v1024_v24 = vld [vmem:[%s3246_s4 + $0xb8] sm:$0xff] }
  0x29   : > { %v341_v25 = vld [vmem:[%s3243_s1 + $0x78] sm:$0xff] }
  0x2b   : > { %1919 = vmatmul.msk.f32.gmra.mxu0 %vm550_vm0, %v328_v26 }
  0x2c   : > { %1939 = vmatmul.msk.f32.gmra.mxu2 %vm550_vm0, %v348_v27  ;;  %1951 = vmatmul.msk.f32.gmra.mxu1 %vm550_vm0, %v328_v26  ;;  %v1023_v26 = vld [vmem:[%s3246_s4 + $0xb0] sm:$0xff] }
  0x2d   : > { %1970 = vmatmul.msk.f32.gmra.mxu3 %vm550_vm0, %v347_v22  ;;  %v1007_v22 = vld [vmem:[%s3246_s4 + $0x30] sm:$0xff] }
  0x2e   : > { %432 = vperm.xlu1 %2019, %v366_v29  }
  0x2f   : > { %522 = vperm.xlu0 %2018, %v384_v28   ;;  %517 = vperm.xlu2 %2020, %v383_v30   ;;  %v1005_v28 = vld [vmem:[%s3246_s4 + $0x20] sm:$0xff] }
  0x30   : > { %v342_v30 = vld [vmem:[%s3243_s1 + $0x80] sm:$0xff] }
  0x33   : > { %1920 = vmatmul.msk.f32.gmra.mxu0 %vm550_vm0, %v329_v31 }
  0x34   : > { %1940 = vmatmul.msk.f32.gmra.mxu2 %vm550_vm0, %v349_v32  ;;  %1952 = vmatmul.msk.f32.gmra.mxu1 %vm550_vm0, %v329_v31 }
  0x35   : > { %1971 = vmatmul.msk.f32.gmra.mxu3 %vm550_vm0, %v348_v27  ;;  %v1006_v27 = vld [vmem:[%s3246_s4 + $0x28] sm:$0xff] }
  0x36   : > { %512 = vperm.xlu1 %2019, %v382_v33   ;;  %v1022_v33 = vld [vmem:[%s3246_s4 + $0xa8] sm:$0xff] }
  0x37   : > { %427 = vperm.xlu0 %2018, %v365_v34   ;;  %422 = vperm.xlu2 %2020, %v364_v35   ;;  %v1021_v34 = vld [vmem:[%s3246_s4 + $0xa0] sm:$0xff] }
  0x3b   : > { %1921 = vmatmul.msk.f32.gmra.mxu0 %vm550_vm0, %v330_v36 }
  0x3c   : > { %1941 = vmatmul.msk.f32.gmra.mxu2 %vm550_vm0, %v350_v37  ;;  %1953 = vmatmul.msk.f32.gmra.mxu1 %vm550_vm0, %v330_v36 }
  0x3d   : > { %1972 = vmatmul.msk.f32.gmra.mxu3 %vm550_vm0, %v349_v32  ;;  %v1004_v32 = vld [vmem:[%s3246_s4 + $0x18] sm:$0xff] }
  0x3e   : > { %417 = vperm.xlu1 %2019, %v363_v39  }
  0x3f   : > { %507 = vperm.xlu0 %2018, %v381_v38   ;;  %502 = vperm.xlu2 %2020, %v380_v40   ;;  %v343_v38 = vld [vmem:[%s3243_s1 + $0x88] sm:$0xff]  ;;  %v1020_v40 = vld [vmem:[%s3246_s4 + $0x98] sm:$0xff] }
  0x43   : > { %1922 = vmatmul.msk.f32.gmra.mxu0 %vm550_vm0, %v331_v41 }
  0x44   : > { %1942 = vmatmul.msk.f32.gmra.mxu2 %vm550_vm0, %v351_v42  ;;  %1954 = vmatmul.msk.f32.gmra.mxu1 %vm550_vm0, %v331_v41  ;;  %v1003_v41 = vld [vmem:[%s3246_s4 + $0x10] sm:$0xff] }
  0x45   : > { %1973 = vmatmul.msk.f32.gmra.mxu3 %vm550_vm0, %v350_v37 }
  0x46   : > { %497 = vperm.xlu1 %2019, %v379_v43  }
  0x47   : > { %412 = vperm.xlu0 %2018, %v362_v44   ;;  %407 = vperm.xlu2 %2020, %v361_v45  }
  0x4b   : > { %1923 = vmatmul.msk.f32.gmra.mxu0 %vm550_vm0, %v332_v46 }
  0x4c   : > { %1943 = vmatmul.msk.f32.gmra.mxu2 %vm550_vm0, %v352_v47  ;;  %1955 = vmatmul.msk.f32.gmra.mxu1 %vm550_vm0, %v332_v46  ;;  %v344_v46 = vld [vmem:[%s3243_s1 + $0x90] sm:$0xff] }
  0x4d   : > { %1974 = vmatmul.msk.f32.gmra.mxu3 %vm550_vm0, %v351_v42  ;;  %v1002_v42 = vld [vmem:[%s3246_s4 + $0x8] sm:$0xff] }
  0x4e   : > { %402 = vperm.xlu1 %2019, %v360_v49   ;;  %v1019_v49 = vld [vmem:[%s3246_s4 + $0x90] sm:$0xff] }
  0x4f   : > { %492 = vperm.xlu0 %2018, %v378_v48   ;;  %487 = vperm.xlu2 %2020, %v377_v50   ;;  %v1001_v48 = vld [vmem:[%s3246_s4] sm:$0xff]  ;;  %v1018_v50 = vld [vmem:[%s3246_s4 + $0x88] sm:$0xff] }
  0x53   : > { %1924 = vmatmul.msk.f32.gmra.mxu0 %vm550_vm0, %v333_v51 }
  0x54   : > { %1944 = vmatmul.msk.f32.gmra.mxu2 %vm550_vm0, %v353_v52  ;;  %1956 = vmatmul.msk.f32.gmra.mxu1 %vm550_vm0, %v333_v51 }
  0x55   : > { %1975 = vmatmul.msk.f32.gmra.mxu3 %vm550_vm0, %v352_v47 }
  0x56   : > { %482 = vperm.xlu1 %2019, %v376_v53  }
  0x57   : > { %397 = vperm.xlu0 %2018, %v359_v54   ;;  %392 = vperm.xlu2 %2020, %v358_v55   ;;  %v1713_v55 = vld [vmem:[%s3248_s6] sm:$0xff] }
  0x5b   : > { %1925 = vmatmul.msk.f32.gmra.mxu0 %vm550_vm0, %v334_v56 }
  0x5c   : > { %1945 = vmatmul.msk.f32.gmra.mxu2 %vm550_vm0, %v354_v57  ;;  %1957 = vmatmul.msk.f32.gmra.mxu1 %vm550_vm0, %v334_v56  ;;  %v1017_v56 = vld [vmem:[%s3246_s4 + $0x80] sm:$0xff] }
  0x5d   : > { %1976 = vmatmul.msk.f32.gmra.mxu3 %vm550_vm0, %v353_v52 }
  0x5e   : > { %472 = vperm.xlu1 %2019, %v374_v58  }
  0x5f   : > { %477 = vperm.xlu0 %2018, %v375_v59   ;;  %1110 = vperm.xlu2 %2020, %v1016_v60  }
  0x63   : > { %1926 = vmatmul.msk.f32.gmra.mxu0 %vm550_vm0, %v335_v61 }
  0x64   : > { %1946 = vmatmul.msk.f32.gmra.mxu2 %vm550_vm0, %v355_v62  ;;  %1958 = vmatmul.msk.f32.gmra.mxu1 %vm550_vm0, %v335_v61 }
  0x65   : > { %1977 = vmatmul.msk.f32.gmra.mxu3 %vm550_vm0, %v354_v57  ;;  %v1714_v57 = vld [vmem:[%s3248_s6 + $0x8] sm:$0x1] }
  0x66   : > { %1190 = vperm.xlu1 %2019, %v1032_v63  }
  0x67   : > { %1105 = vperm.xlu0 %2018, %v1015_v0   ;;  %1100 = vperm.xlu2 %2020, %v1014_v1  }
  0x6b   : > { %1927 = vmatmul.msk.f32.gmra.mxu0 %vm550_vm0, %v336_v2 }
  0x6c   : > { %1947 = vmatmul.msk.f32.gmra.mxu2 %vm550_vm0, %v356_v3  ;;  %1959 = vmatmul.msk.f32.gmra.mxu1 %vm550_vm0, %v336_v2 }
  0x6d   : > { %1978 = vmatmul.msk.f32.gmra.mxu3 %vm550_vm0, %v355_v62 }
  0x6e   : > { %1095 = vperm.xlu1 %2019, %v1013_v4   ;;  %v543_v4 = vpop.permute.xlu2 %542 }
  0x6f   : > { %1185 = vperm.xlu0 %2018, %v1031_v5   ;;  %1180 = vperm.xlu2 %2020, %v1030_v6  }
  0x73   : > { %1928 = vmatmul.msk.f32.gmra.mxu0 %vm550_vm0, %v337_v7 }
  0x74   : > { %1948 = vmatmul.msk.f32.gmra.mxu2 %vm550_vm0, %v357_v8  ;;  %1960 = vmatmul.msk.f32.gmra.mxu1 %vm550_vm0, %v337_v7 }
  0x75   : > { %1979 = vmatmul.msk.f32.gmra.mxu3 %vm550_vm0, %v356_v3 }
  0x76   : > { %1175 = vperm.xlu1 %2019, %v1029_v9  }
  0x77   : > { %1090 = vperm.xlu0 %2018, %v1012_v10   ;;  %1085 = vperm.xlu2 %2020, %v1011_v11   ;;  %v2532_v11 = vpop.permute.xlu2 %452 }
  0x7b   : > { %1929 = vmatmul.msk.f32.gmra.mxu0 %vm550_vm0, %v338_v12 }
  0x7c   : > { %1961 = vmatmul.msk.f32.gmra.mxu1 %vm550_vm0, %v338_v12 }
  0x7d   : > { %1980 = vmatmul.msk.f32.gmra.mxu3 %vm550_vm0, %v357_v8 }
  0x7e   : > { %1080 = vperm.xlu1 %2019, %v1010_v13  }
  0x7f   : > { %1170 = vperm.xlu0 %2018, %v1028_v14   ;;  %1165 = vperm.xlu2 %2020, %v1027_v15  }
  0x80   : > { %v2516_v1 = vpop.permute.xlu1 %547 }
  0x81   : > { %v2506_v60 = vpop.permute.xlu0 %467 }
  0x83   : > { %1930 = vmatmul.msk.f32.gmra.mxu0 %vm550_vm0, %v339_v16 }
  0x84   : > { %1962 = vmatmul.msk.f32.gmra.mxu1 %vm550_vm0, %v339_v16 }
  0x86   : > { %1160 = vperm.xlu1 %2019, %v1026_v18  }
  0x87   : > { %1075 = vperm.xlu0 %2018, %v1009_v19   ;;  %1070 = vperm.xlu2 %2020, %v1008_v20  }
  0x88   : > { %v2530_v9 = vpop.permute.xlu1 %457 }
  0x89   : > { %v2520_v3 = vpop.permute.xlu0 %462 }
  0x8b   : > { %1931 = vmatmul.msk.f32.gmra.mxu0 %vm550_vm0, %v340_v21 }
  0x8c   : > { %1963 = vmatmul.msk.f32.gmra.mxu1 %vm550_vm0, %v340_v21 }
  0x8e   : > { %1065 = vperm.xlu1 %2019, %v1007_v22   ;;  %v533_v22 = vpop.permute.xlu2 %532 }
  0x8f   : > { %1155 = vperm.xlu0 %2018, %v1025_v23   ;;  %1150 = vperm.xlu2 %2020, %v1024_v24  }
  0x90   : > { %v2540_v16 = vpop.permute.xlu1 %447 }
  0x91   : > { %v538_v10 = vpop.permute.xlu0 %537 }
  0x93   : > { %1932 = vmatmul.msk.f32.gmra.mxu0 %vm550_vm0, %v341_v25 }
  0x94   : > { %1964 = vmatmul.msk.f32.gmra.mxu1 %vm550_vm0, %v341_v25 }
  0x96   : > { %1145 = vperm.xlu1 %2019, %v1023_v26  }
  0x97   : > { %1060 = vperm.xlu0 %2018, %v1006_v27   ;;  %1055 = vperm.xlu2 %2020, %v1005_v28  }
  0x98   : > { %v2419_v29 = vpop.f32.mrf.mxu0  ;;  %v528_v24 = vpop.permute.xlu1 %527 }
  0x99   : > { %3270 = vst [vmem:[#allocation2_spill] sm:$0xff] %v2419_v29  ;;  %v2424_v31 = vpop.f32.mrf.mxu1  ;;  %v2542_v18 = vpop.permute.xlu0 %442 }
  0x9a   : > { %3271 = vst [vmem:[#allocation3_spill] sm:$0xff] %v2424_v31 }
  0x9b   : > { %1933 = vmatmul.msk.f32.gmra.mxu0 %vm550_vm0, %v342_v30 }
  0x9c   : > { %1965 = vmatmul.msk.f32.gmra.mxu1 %vm550_vm0, %v342_v30 }
  0x9e   : > { %1050 = vperm.xlu1 %2019, %v1004_v32   ;;  %v2556_v32 = vpop.permute.xlu2 %437 }
  0x9f   : > { %1140 = vperm.xlu0 %2018, %v1022_v33   ;;  %v2437_v35 = vpop.f32.mrf.mxu2  ;;  %1135 = vperm.xlu2 %2020, %v1021_v34  }
  0xa0   : > { %v2439_v36 = vpop.f32.mrf.mxu3  ;;  %v2441_v37 = vpop.f32.mrf.mxu0 }
  0xa1   : > { %3272 = vst [vmem:[#allocation4_spill] sm:$0xff] %v2441_v37  ;;  %v2446_v39 = vpop.f32.mrf.mxu1  ;;  %v2552_v28 = vpop.permute.xlu0 %522 }
  0xa2   : > { %3273 = vst [vmem:[#allocation5_spill] sm:$0xff] %v2446_v39 }
  0xa3   : > { %1934 = vmatmul.msk.f32.gmra.mxu0 %vm550_vm0, %v343_v38 }
  0xa4   : > { %1966 = vmatmul.msk.f32.gmra.mxu1 %vm550_vm0, %v343_v38 }
  0xa6   : > { %1130 = vperm.xlu1 %2019, %v1020_v40  }
  0xa7   : > { %1045 = vperm.xlu0 %2018, %v1003_v41   ;;  %v2459_v43 = vpop.f32.mrf.mxu2  ;;  %1040 = vperm.xlu2 %2020, %v1002_v42   ;;  %v2562_v41 = vpop.permute.xlu1 %432 }
  0xa8   : > { %v2461_v44 = vpop.f32.mrf.mxu3  ;;  %v2463_v45 = vpop.f32.mrf.mxu0 }
  0xa9   : > { %3274 = vst [vmem:[#allocation6_spill] sm:$0xff] %v2463_v45  ;;  %v2468_v47 = vpop.f32.mrf.mxu1  ;;  %v2564_v42 = vpop.permute.xlu0 %427 }
  0xaa   : > { %3275 = vst [vmem:[#allocation7_spill] sm:$0xff] %v2468_v47 }
  0xab   : > { %1935 = vmatmul.msk.f32.gmra.mxu0 %vm550_vm0, %v344_v46  ;;  %3286 = vst [vmem:[#allocation18_spill] sm:$0xff] %v2564_v42 }
  0xac   : > { %1967 = vmatmul.msk.f32.gmra.mxu1 %vm550_vm0, %v344_v46  ;;  %v2566_v46 = vpop.permute.xlu2 %517 }
  0xae   : > { %1035 = vperm.xlu1 %2019, %v1001_v48  }
  0xaf   : > { %1125 = vperm.xlu0 %2018, %v1019_v49   ;;  %v2481_v51 = vpop.f32.mrf.mxu2  ;;  %1120 = vperm.xlu2 %2020, %v1018_v50  }
  0xb0   : > { %v2483_v52 = vpop.f32.mrf.mxu3  ;;  %v2485_v53 = vpop.f32.mrf.mxu0 }
  0xb1   : > { %3276 = vst [vmem:[#allocation8_spill] sm:$0xff] %v2485_v53  ;;  %v2487_v54 = vpop.f32.mrf.mxu1 }
  0xb2   : > { %3277 = vst [vmem:[#allocation9_spill] sm:$0xff] %v2487_v54 }
  0xb3   : > { %1936 = vmatmul.msk.f32.gmra.mxu0 %vm550_vm0, %v2137_v17 }
  0xb4   : > { %v2576_v31 = vpop.permute.xlu2 %422 }
  0xb5   : > { %3287 = vst [vmem:[#allocation19_spill] sm:$0xff] %v2576_v31 }
  0xb6   : > { %1717 = vperm.xlu1 %2019, %v1713_v55  }
  0xb7   : > { %1115 = vperm.xlu0 %2018, %v1017_v56   ;;  %v2500_v58 = vpop.f32.mrf.mxu2  ;;  %1722 = vperm.xlu2 %2020, %v1714_v57   ;;  %v2572_v56 = vpop.permute.xlu1 %512 }
  0xb8   : > { %v2502_v59 = vpop.f32.mrf.mxu3  ;;  %v2504_v17 = vpop.f32.mrf.mxu0 }
  0xb9   : > { %3278 = vst [vmem:[#allocation10_spill] sm:$0xff] %v2504_v17  ;;  %v2508_v61 = vpop.f32.mrf.mxu1  ;;  %v2574_v57 = vpop.permute.xlu0 %507 }
  0xba   : > { %3279 = vst [vmem:[#allocation11_spill] sm:$0xff] %v2508_v61 }
  0xbf   : > { %v2510_v62 = vpop.f32.mrf.mxu2 }
  0xc0   : > { %v2512_v63 = vpop.f32.mrf.mxu3  ;;  %v2514_v0 = vpop.f32.mrf.mxu0 }
  0xc1   : > { %3280 = vst [vmem:[#allocation12_spill] sm:$0xff] %v2514_v0  ;;  %v2518_v2 = vpop.f32.mrf.mxu1  ;;  %v2583_v0 = vpop.permute.xlu1 %417 }
  0xc2   : > { %3281 = vst [vmem:[#allocation13_spill] sm:$0xff] %v2518_v2  ;;  %v2585_v31 = vpop.permute.xlu0 %412 }
  0xc7   : > { %v2522_v5 = vpop.f32.mrf.mxu2 }
  0xc8   : > { %v2524_v6 = vpop.f32.mrf.mxu3  ;;  %v2526_v7 = vpop.f32.mrf.mxu0 }
  0xc9   : > { %3282 = vst [vmem:[#allocation14_spill] sm:$0xff] %v2526_v7  ;;  %v2528_v8 = vpop.f32.mrf.mxu1 }
  0xca   : > { %3283 = vst [vmem:[#allocation15_spill] sm:$0xff] %v2528_v8 }
  0xcf   : > { %v742_v12 = vpop.f32.mrf.mxu2 }
  0xd0   : > { %v2534_v13 = vpop.f32.mrf.mxu3  ;;  %v2536_v14 = vpop.f32.mrf.mxu0 }
  0xd1   : > { %3284 = vst [vmem:[#allocation16_spill] sm:$0xff] %v2536_v14  ;;  %v2538_v15 = vpop.f32.mrf.mxu1 }
  0xd2   : > { %3285 = vst [vmem:[#allocation17_spill] sm:$0xff] %v2538_v15 }
  0xd7   : > { %v745_v19 = vpop.f32.mrf.mxu2 }
  0xd8   : > { %v2544_v20 = vpop.f32.mrf.mxu3  ;;  %v2546_v21 = vpop.f32.mrf.mxu0  ;;  %v746_v8 = vadd.f32 %v745_v19, %v528_v24 }
  0xd9   : > { %v2548_v23 = vpop.f32.mrf.mxu1 }
  0xdf   : > { %v748_v25 = vpop.f32.mrf.mxu2 }
  0xe0   : > { %v858_v26 = vpop.f32.mrf.mxu3  ;;  %v2550_v27 = vpop.f32.mrf.mxu0  ;;  %v749_v17 = vadd.f32 %v748_v25, %v533_v22 }
  0xe1   : > { %v2554_v30 = vpop.f32.mrf.mxu1 }
  0xe2   : > { %v929_v14 = vmax.f32 %v749_v17, 0.0  ;;  %v734_v17 = vadd.f32 %v2500_v58, %v2574_v57 }
  0xe7   : > { %v751_v33 = vpop.f32.mrf.mxu2 }
  0xe8   : > { %v861_v34 = vpop.f32.mrf.mxu3  ;;  %v2558_v38 = vpop.f32.mrf.mxu0  ;;  %v752_v53 = vadd.f32 %v751_v33, %v538_v10 }
  0xe9   : > { %v2560_v40 = vpop.f32.mrf.mxu1  ;;  %v862_v33 = vadd.f32 %v861_v34, %v533_v22  ;;  %v856_v22 = vadd.f32 %v2544_v20, %v2552_v28  ;;  %v850_v20 = vadd.f32 %v2524_v6, %v2572_v56 }
  0xea   : > { %v931_v7 = vmax.f32 %v752_v53, 0.0  ;;  %v927_v53 = vmax.f32 %v746_v8, 0.0 }
  0xef   : > { %v754_v48 = vpop.f32.mrf.mxu2 }
  0xf0   : > { %v864_v49 = vpop.f32.mrf.mxu3  ;;  %v2568_v50 = vpop.f32.mrf.mxu0  ;;  %v755_v39 = vadd.f32 %v754_v48, %v543_v4  ;;  %v743_v48 = vadd.f32 %v742_v12, %v2552_v28  ;;  %v737_v12 = vadd.f32 %v2510_v62, %v2572_v56  ;;  %v926_v28 = vmax.f32 %v856_v22, 0.0 }
  0xf1   : > { %v2570_v55 = vpop.f32.mrf.mxu1  ;;  %v493_v62 = vpop.permute.xlu0 %492  ;;  %v922_v56 = vmax.f32 %v850_v20, 0.0  ;;  %v3291_v20 = vld [vmem:[#allocation19_spill] sm:$0xff] }
  0xf2   : > { %v933_v2 = vmax.f32 %v755_v39, 0.0  ;;  %v503_v39 = vpop.permute.xlu2 %502 }
  0xf3   : > { %v731_v8 = vadd.f32 %v2481_v51, %v503_v39 }
  0xf7   : > { %v757_v29 = vpop.f32.mrf.mxu2 }
  0xf8   : > { %v758_v37 = vadd.f32 %v757_v29, %v2516_v1  ;;  %v867_v47 = vpop.f32.mrf.mxu3  ;;  %v2579_v45 = vpop.f32.mrf.mxu0 }
  0xf9   : > { %v2581_v54 = vpop.f32.mrf.mxu1  ;;  %v868_v42 = vadd.f32 %v867_v47, %v543_v4  ;;  %v859_v4 = vadd.f32 %v858_v26, %v528_v24  ;;  %v853_v24 = vadd.f32 %v2534_v13, %v2566_v46 }
  0xfa   : > { %v935_v61 = vmax.f32 %v758_v37, 0.0  ;;  %v2605_v26 = vpop.permute.xlu2 %407 }
  0xfb   : > { %v934_v47 = vmax.f32 %v868_v42, 0.0  ;;  %v930_v42 = vmax.f32 %v862_v33, 0.0  ;;  %v928_v51 = vmax.f32 %v859_v4, 0.0  ;;  %v924_v13 = vmax.f32 %v853_v24, 0.0  ;;  %v3289_v24 = vld [vmem:[#allocation16_spill] sm:$0xff] }
  0xfc   : > { %1306 = vmatpush.msrb.mxu3 %v935_v61  ;;  %v740_v61 = vadd.f32 %v2522_v5, %v2566_v46 }
  0xfe   : > { %1307 = vmatpush.msrb.mxu3 %v933_v2  ;;  %v865_v2 = vadd.f32 %v864_v49, %v538_v10  ;;  %v498_v10 = vpop.permute.xlu1 %497  ;;  %v921_v49 = vmax.f32 %v737_v12, 0.0 }
  0xff   : > { %v728_v58 = vadd.f32 %v2459_v43, %v498_v10 }
 0x100   : > { %v870_v29 = vpop.f32.mrf.mxu3  ;;  %1308 = vmatpush.msrb.mxu3 %v931_v7  ;;  %v2588_v15 = vpop.f32.mrf.mxu0  ;;  %v925_v7 = vmax.f32 %v743_v48, 0.0  ;;  %v932_v5 = vmax.f32 %v865_v2, 0.0  ;;  %v919_v48 = vmax.f32 %v734_v17, 0.0  ;;  %v844_v2 = vadd.f32 %v2502_v59, %v503_v39 }
 0x101   : > { %v871_v37 = vadd.f32 %v870_v29, %v2516_v1  ;;  %v2591_v25 = vpop.f32.mrf.mxu1  ;;  %v923_v1 = vmax.f32 %v740_v61, 0.0  ;;  %v725_v29 = vadd.f32 %v2437_v35, %v493_v62  ;;  %v915_v43 = vmax.f32 %v728_v58, 0.0  ;;  %v398_v58 = vpop.permute.xlu0 %397 }
 0x102   : > { %1309 = vmatpush.msrb.mxu3 %v929_v14  ;;  %v847_v61 = vadd.f32 %v2512_v63, %v2574_v57  ;;  %v841_v63 = vadd.f32 %v2483_v52, %v498_v10  ;;  %v704_v57 = vadd.f32 %v2588_v15, %v2530_v9  ;;  %v817_v39 = vadd.f32 %v2591_v25, %v2530_v9  ;;  %v2625_v52 = vpop.permute.xlu2 %487 }
 0x103   : > { %v936_v19 = vmax.f32 %v871_v37, 0.0  ;;  %v917_v37 = vmax.f32 %v731_v8, 0.0  ;;  %v838_v17 = vadd.f32 %v2461_v44, %v493_v62  ;;  %v814_v15 = vadd.f32 %v2581_v54, %v2532_v11 }
 0x104   : > { %1310 = vmatpush.msrb.mxu3 %v927_v53  ;;  %v913_v53 = vmax.f32 %v725_v29, 0.0  ;;  %v920_v33 = vmax.f32 %v847_v61, 0.0  ;;  %v835_v9 = vadd.f32 %v2439_v36, %v2625_v52  ;;  %v698_v44 = vadd.f32 %v2568_v50, %v2540_v16 }
 0x105   : > { %1532 = vmatpush.msrb.mxu1 %v936_v19  ;;  %v811_v8 = vadd.f32 %v2570_v55, %v2540_v16  ;;  %v900_v54 = vmax.f32 %v817_v39, 0.0  ;;  %v898_v62 = vmax.f32 %v814_v15, 0.0  ;;  %v692_v16 = vadd.f32 %v2550_v27, %v2556_v32 }
 0x106   : > { %1311 = vmatpush.msrb.mxu3 %v925_v7  ;;  %v2631_v25 = vpop.permute.xlu1 %402  ;;  %v912_v55 = vmax.f32 %v835_v9, 0.0  ;;  %v895_v22 = vmax.f32 %v698_v44, 0.0 }
 0x107   : > { %1533 = vmatpush.msrb.mxu1 %v934_v47  ;;  %v891_v29 = vmax.f32 %v692_v16, 0.0 }
 0x108   : > { %1312 = vmatpush.msrb.mxu3 %v923_v1  ;;  %v706_v14 = vpop.f32.mrf.mxu0 }
 0x109   : > { %1534 = vmatpush.msrb.mxu1 %v932_v5  ;;  %v819_v34 = vpop.f32.mrf.mxu1  ;;  %v707_v35 = vadd.f32 %v706_v14, %v2520_v3  ;;  %v899_v5 = vmax.f32 %v704_v57, 0.0  ;;  %v914_v14 = vmax.f32 %v838_v17, 0.0  ;;  %v478_v44 = vpop.permute.xlu0 %477 }
 0x10a   : > { %1313 = vmatpush.msrb.mxu3 %v921_v49  ;;  %v820_v12 = vadd.f32 %v819_v34, %v2520_v3  ;;  %v701_v3 = vadd.f32 %v2579_v45, %v2532_v11  ;;  %v916_v45 = vmax.f32 %v841_v63, 0.0  ;;  %v695_v11 = vadd.f32 %v2558_v38, %v2542_v18 }
 0x10b   : > { %1535 = vmatpush.msrb.mxu1 %v930_v42  ;;  %v901_v1 = vmax.f32 %v707_v35, 0.0  ;;  %v808_v49 = vadd.f32 %v2560_v40, %v2542_v18  ;;  %v805_v38 = vadd.f32 %v2554_v30, %v2556_v32  ;;  %v896_v34 = vmax.f32 %v811_v8, 0.0  ;;  %v3290_v30 = vld [vmem:[#allocation17_spill] sm:$0xff]  ;;  %v3301_v8 = vld [vmem:[#allocation7_spill] sm:$0xff] }
 0x10c   : > { %1314 = vmatpush.msrb.mxu3 %v919_v48  ;;  %v902_v4 = vmax.f32 %v820_v12, 0.0  ;;  %v897_v50 = vmax.f32 %v701_v3, 0.0  ;;  %v689_v42 = vadd.f32 %v2546_v21, %v2562_v41  ;;  %v893_v18 = vmax.f32 %v695_v11, 0.0  ;;  %v3288_v48 = vld [vmem:[#allocation18_spill] sm:$0xff] }
 0x10d   : > { %1536 = vmatpush.msrb.mxu1 %v928_v51  ;;  %v802_v40 = vadd.f32 %v2548_v23, %v2562_v41  ;;  %v894_v27 = vmax.f32 %v808_v49, 0.0  ;;  %v686_v51 = vadd.f32 %v3289_v24, %v3288_v48  ;;  %v799_v32 = vadd.f32 %v3290_v30, %v3288_v48  ;;  %v3302_v49 = vld [vmem:[#allocation4_spill] sm:$0xff] }
 0x10e   : > { %1315 = vmatpush.msrb.mxu3 %v917_v37  ;;  %v892_v21 = vmax.f32 %v805_v38, 0.0  ;;  %v483_v61 = vpop.permute.xlu1 %482  ;;  %v889_v41 = vmax.f32 %v689_v42, 0.0 }
 0x10f   : > { %1537 = vmatpush.msrb.mxu1 %v926_v28  ;;  %v3292_v28 = vld [vmem:[#allocation14_spill] sm:$0xff]  ;;  %v888_v12 = vmax.f32 %v799_v32, 0.0  ;;  %v938_v32 = vld [vmem:[%s3245_s3 + $0x8] sm:$0xff] }
 0x110   : > { %1316 = vmatpush.msrb.mxu3 %v915_v43  ;;  %v709_v46 = vpop.f32.mrf.mxu0  ;;  %v683_v43 = vadd.f32 %v3292_v28, %v3291_v20 }
 0x111   : > { %1538 = vmatpush.msrb.mxu1 %v924_v13  ;;  %v710_v19 = vadd.f32 %v709_v46, %v2506_v60  ;;  %v822_v6 = vpop.f32.mrf.mxu1  ;;  %v3293_v13 = vld [vmem:[#allocation15_spill] sm:$0xff] }
 0x112   : > { %v823_v7 = vadd.f32 %v822_v6, %v2506_v60  ;;  %1317 = vmatpush.msrb.mxu3 %v913_v53  ;;  %v918_v60 = vmax.f32 %v844_v2, 0.0  ;;  %v796_v46 = vadd.f32 %v3293_v13, %v3291_v20  ;;  %v890_v53 = vmax.f32 %v802_v40, 0.0  ;;  %v3294_v2 = vld [vmem:[#allocation12_spill] sm:$0xff]  ;;  %v3295_v6 = vld [vmem:[#allocation13_spill] sm:$0xff] }
 0x113   : > { %1539 = vmatpush.msrb.mxu1 %v922_v56  ;;  %v903_v59 = vmax.f32 %v710_v19, 0.0  ;;  %v680_v35 = vadd.f32 %v3294_v2, %v2583_v0  ;;  %v887_v19 = vmax.f32 %v686_v51, 0.0  ;;  %v793_v56 = vadd.f32 %v3295_v6, %v2583_v0  ;;  %v943_v6 = vld [vmem:[%s3245_s3 + $0x30] sm:$0xff] }
 0x114   : > { %v904_v47 = vmax.f32 %v823_v7, 0.0  ;;  %v3296_v7 = vld [vmem:[#allocation10_spill] sm:$0xff]  ;;  %v885_v57 = vmax.f32 %v683_v43, 0.0  ;;  %v886_v39 = vmax.f32 %v796_v46, 0.0 }
 0x115   : > { %1540 = vmatpush.msrb.mxu1 %v920_v33  ;;  %1193 = vmatpush.msrb.mxu2 %v903_v59  ;;  %v677_v63 = vadd.f32 %v3296_v7, %v2585_v31  ;;  %v3297_v33 = vld [vmem:[#allocation11_spill] sm:$0xff]  ;;  %v883_v3 = vmax.f32 %v680_v35, 0.0  ;;  %v884_v15 = vmax.f32 %v793_v56, 0.0  ;;  %v937_v43 = vld [vmem:[%s3245_s3] sm:$0xff]  ;;  %v948_v7 = vld [vmem:[%s3245_s3 + $0x58] sm:$0xff] }
 0x116   : > { %1419 = vmatpush.msrb.mxu0 %v904_v47  ;;  %v790_v59 = vadd.f32 %v3297_v33, %v2585_v31  ;;  %v3298_v47 = vld [vmem:[#allocation8_spill] sm:$0xff]  ;;  %v941_v35 = vld [vmem:[%s3245_s3 + $0x20] sm:$0xff]  ;;  %v946_v56 = vld [vmem:[%s3245_s3 + $0x48] sm:$0xff] }
 0x117   : > { %1541 = vmatpush.msrb.mxu1 %v918_v60  ;;  %1194 = vmatpush.msrb.mxu2 %v901_v1  ;;  %v674_v17 = vadd.f32 %v3298_v47, %v2605_v26  ;;  %v3299_v60 = vld [vmem:[#allocation9_spill] sm:$0xff]  ;;  %v881_v31 = vmax.f32 %v677_v63, 0.0  ;;  %v947_v63 = vld [vmem:[%s3245_s3 + $0x50] sm:$0xff]  ;;  %v949_v33 = vld [vmem:[%s3245_s3 + $0x60] sm:$0xff] }
 0x118   : > { %1420 = vmatpush.msrb.mxu0 %v902_v4  ;;  %v2637_v10 = vpop.f32.mrf.mxu0  ;;  %v787_v0 = vadd.f32 %v3299_v60, %v2605_v26  ;;  %v3300_v4 = vld [vmem:[#allocation6_spill] sm:$0xff]  ;;  %v668_v26 = vadd.f32 %v3302_v49, %v398_v58  ;;  %v951_v47 = vld [vmem:[%s3245_s3 + $0x70] sm:$0xff]  ;;  %v954_v60 = vld [vmem:[%s3245_s3 + $0x88] sm:$0xff] }
 0x119   : > { %1542 = vmatpush.msrb.mxu1 %v916_v45  ;;  %v2641_v36 = vpop.f32.mrf.mxu1  ;;  %1195 = vmatpush.msrb.mxu2 %v899_v5  ;;  %v671_v9 = vadd.f32 %v3300_v4, %v2631_v25  ;;  %v393_v5 = vpop.permute.xlu2 %392  ;;  %v879_v16 = vmax.f32 %v674_v17, 0.0  ;;  %v956_v4 = vld [vmem:[%s3245_s3 + $0x98] sm:$0xff] }
 0x11a   : > { %1421 = vmatpush.msrb.mxu0 %v900_v54  ;;  %v784_v54 = vadd.f32 %v3301_v8, %v2631_v25  ;;  %v957_v8 = vld [vmem:[%s3245_s3 + $0xa0] sm:$0xff] }
 0x11b   : > { %1543 = vmatpush.msrb.mxu1 %v914_v14  ;;  %1196 = vmatpush.msrb.mxu2 %v897_v50  ;;  %v882_v50 = vmax.f32 %v790_v59, 0.0  ;;  %v877_v25 = vmax.f32 %v671_v9, 0.0  ;;  %v955_v9 = vld [vmem:[%s3245_s3 + $0x90] sm:$0xff] }
 0x11c   : > { %1422 = vmatpush.msrb.mxu0 %v898_v62  ;;  %v473_v62 = vpop.permute.xlu1 %472  ;;  %v878_v24 = vmax.f32 %v784_v54, 0.0 }
 0x11d   : > { %1544 = vmatpush.msrb.mxu1 %v912_v55  ;;  %1197 = vmatpush.msrb.mxu2 %v895_v22  ;;  %v3303_v55 = vld [vmem:[#allocation5_spill] sm:$0xff]  ;;  %v826_v38 = vadd.f32 %v2641_v36, %v473_v62 }
 0x11e   : > { %1423 = vmatpush.msrb.mxu0 %v896_v34  ;;  %v781_v22 = vadd.f32 %v3303_v55, %v398_v58  ;;  %v880_v34 = vmax.f32 %v787_v0, 0.0  ;;  %v953_v0 = vld [vmem:[%s3245_s3 + $0x80] sm:$0xff] }
 0x11f   : > { %1198 = vmatpush.msrb.mxu2 %v893_v18  ;;  %v3304_v18 = vld [vmem:[#allocation2_spill] sm:$0xff]  ;;  %v906_v36 = vmax.f32 %v826_v38, 0.0  ;;  %v964_v38 = vld [vmem:[%s3245_s3 + $0xd8] sm:$0xff] }
 0x120   : > { %1424 = vmatpush.msrb.mxu0 %v894_v27  ;;  %v2657_v37 = vpop.f32.mrf.mxu0  ;;  %v665_v40 = vadd.f32 %v3304_v18, %v393_v5  ;;  %v3305_v27 = vld [vmem:[#allocation3_spill] sm:$0xff]  ;;  %v876_v30 = vmax.f32 %v781_v22, 0.0 }
 0x121   : > { %v828_v23 = vpop.f32.mrf.mxu1  ;;  %1199 = vmatpush.msrb.mxu2 %v891_v29  ;;  %v778_v48 = vadd.f32 %v3305_v27, %v393_v5  ;;  %v875_v29 = vmax.f32 %v668_v26, 0.0  ;;  %v2737_v17 = vpop.permute.xlu2 %1110  ;;  %v962_v26 = vld [vmem:[%s3245_s3 + $0xc8] sm:$0xff]  ;;  %v965_v27 = vld [vmem:[%s3245_s3 + $0xe0] sm:$0xff] }
 0x122   : > { %1425 = vmatpush.msrb.mxu0 %v892_v21  ;;  %v829_v11 = vadd.f32 %v828_v23, %v478_v44  ;;  %v873_v28 = vmax.f32 %v665_v40, 0.0 }
 0x123   : > { %1200 = vmatpush.msrb.mxu2 %v889_v41  ;;  %v874_v23 = vmax.f32 %v778_v48, 0.0  ;;  %v716_v41 = vadd.f32 %v2657_v37, %v478_v44  ;;  %v939_v37 = vld [vmem:[%s3245_s3 + $0x10] sm:$0xff]  ;;  %v2757_v44 = vpop.permute.xlu0 %1105 }
 0x124   : > { %1426 = vmatpush.msrb.mxu0 %v890_v53  ;;  %v908_v51 = vmax.f32 %v829_v11, 0.0  ;;  %v940_v53 = vld [vmem:[%s3245_s3 + $0x18] sm:$0xff]  ;;  %v2729_v59 = vpop.permute.xlu1 %1190 }
 0x125   : > { %1201 = vmatpush.msrb.mxu2 %v887_v19  ;;  %v907_v46 = vmax.f32 %v716_v41, 0.0  ;;  %v944_v19 = vld [vmem:[%s3245_s3 + $0x38] sm:$0xff]  ;;  %3306 = vst [vmem:[#allocation18_spill] sm:$0xff] %v2729_v59 }
 0x126   : > { %1427 = vmatpush.msrb.mxu0 %v888_v12  ;;  %v945_v12 = vld [vmem:[%s3245_s3 + $0x40] sm:$0xff]  ;;  %v960_v11 = vld [vmem:[%s3245_s3 + $0xb8] sm:$0xff] }
 0x127   : > { %1202 = vmatpush.msrb.mxu2 %v885_v57  ;;  %v950_v57 = vld [vmem:[%s3245_s3 + $0x68] sm:$0xff] }
 0x128   : > { %1428 = vmatpush.msrb.mxu0 %v886_v39  ;;  %v718_v1 = vpop.f32.mrf.mxu0  ;;  %v952_v39 = vld [vmem:[%s3245_s3 + $0x78] sm:$0xff] }
 0x129   : > { %v831_v45 = vpop.f32.mrf.mxu1  ;;  %1203 = vmatpush.msrb.mxu2 %v883_v3  ;;  %v719_v21 = vadd.f32 %v718_v1, %v483_v61  ;;  %v2747_v1 = vpop.permute.xlu2 %1100 }
 0x12a   : > { %v832_v14 = vadd.f32 %v831_v45, %v483_v61  ;;  %1429 = vmatpush.msrb.mxu0 %v884_v15  ;;  %v713_v61 = vadd.f32 %v2637_v10, %v473_v62  ;;  %v942_v10 = vld [vmem:[%s3245_s3 + $0x28] sm:$0xff] }
 0x12b   : > { %1204 = vmatpush.msrb.mxu2 %v881_v31  ;;  %v958_v31 = vld [vmem:[%s3245_s3 + $0xa8] sm:$0xff]  ;;  %v2769_v54 = vpop.permute.xlu0 %1185 }
 0x12c   : > { %1430 = vmatpush.msrb.mxu0 %v882_v50  ;;  %v910_v42 = vmax.f32 %v832_v14, 0.0  ;;  %v905_v2 = vmax.f32 %v713_v61, 0.0  ;;  %v2739_v3 = vpop.permute.xlu1 %1095  ;;  %3309 = vst [vmem:[#allocation19_spill] sm:$0xff] %v2769_v54  ;;  %v959_v50 = vld [vmem:[%s3245_s3 + $0xb0] sm:$0xff] }
 0x12d   : > { %1205 = vmatpush.msrb.mxu2 %v879_v16  ;;  %v961_v16 = vld [vmem:[%s3245_s3 + $0xc0] sm:$0xff] }
 0x12e   : > { %1431 = vmatpush.msrb.mxu0 %v880_v34  ;;  %1545 = vmatpush.msrb.mxu1 %v910_v42  ;;  %v963_v34 = vld [vmem:[%s3245_s3 + $0xd0] sm:$0xff] }
 0x12f   : > { %1206 = vmatpush.msrb.mxu2 %v877_v25  ;;  %v966_v25 = vld [vmem:[%s3245_s3 + $0xe8] sm:$0xff] }
 0x130   : > { %1432 = vmatpush.msrb.mxu0 %v878_v24  ;;  %1546 = vmatpush.msrb.mxu1 %v908_v51  ;;  %v721_v58 = vpop.f32.mrf.mxu0  ;;  %v968_v51 = vld [vmem:[%s3245_s3 + $0xf8] sm:$0xff] }
 0x131   : > { %v722_v20 = vadd.f32 %v721_v58, %v2625_v52  ;;  %1207 = vmatpush.msrb.mxu2 %v875_v29  ;;  %v909_v52 = vmax.f32 %v719_v21, 0.0  ;;  %v2759_v45 = vpop.permute.xlu2 %1180  ;;  %v967_v58 = vld [vmem:[%s3245_s3 + $0xf0] sm:$0xff] }
 0x132   : > { %1433 = vmatpush.msrb.mxu0 %v876_v30  ;;  %1547 = vmatpush.msrb.mxu1 %v906_v36  ;;  %3308 = vst [vmem:[#allocation17_spill] sm:$0xff] %v2759_v45  ;;  %v991_v45 = vld [vmem:[%s3245_s3 + $0x1b0] sm:$0xff] }
 0x133   : > { %1208 = vmatpush.msrb.mxu2 %v873_v28  ;;  %v911_v13 = vmax.f32 %v722_v20, 0.0  ;;  %1548 = vmatmul.f32.vlgmr.msrb.gmra.mxu1 %v938_v32  ;;  %v2784_v62 = vpop.permute.xlu0 %1090  ;;  %v969_v20 = vld [vmem:[%s3245_s3 + $0x100] sm:$0xff] }
 0x134   : > { %1434 = vmatpush.msrb.mxu0 %v874_v23  ;;  %1209 = vmatmul.f32.vlgmr.msrb.gmra.mxu2 %v937_v43  ;;  %v2749_v15 = vpop.permute.xlu1 %1175 }
 0x135   : > { %1435 = vmatmul.f32.vlgmr.msrb.gmra.mxu0 %v937_v43  ;;  %1318 = vmatpush.msrb.mxu3 %v911_v13  ;;  %3307 = vst [vmem:[#allocation16_spill] sm:$0xff] %v2749_v15  ;;  %v972_v13 = vld [vmem:[%s3245_s3 + $0x118] sm:$0xff] }
 0x136   : > { %v992_v15 = vld [vmem:[%s3245_s3 + $0x1b8] sm:$0xff] }
 0x137   : > { %1319 = vmatpush.msrb.mxu3 %v909_v52  ;;  %v971_v52 = vld [vmem:[%s3245_s3 + $0x110] sm:$0xff] }
 0x139   : > { %1320 = vmatpush.msrb.mxu3 %v907_v46  ;;  %v2774_v14 = vpop.permute.xlu2 %1085 }
 0x13b   : > { %1321 = vmatpush.msrb.mxu3 %v905_v2  ;;  %1551 = vmatmul.f32.gmra.mxu1 %v940_v53  ;;  %v2799_v42 = vpop.permute.xlu0 %1170 }
 0x13c   : > { %1212 = vmatmul.f32.gmra.mxu2 %v939_v37  ;;  %1322 = vmatmul.f32.vlgmr.msrb.gmra.mxu3 %v938_v32  ;;  %v2764_v5 = vpop.permute.xlu1 %1080  ;;  %3313 = vst [vmem:[#allocation13_spill] sm:$0xff] %v2799_v42  ;;  %v970_v32 = vld [vmem:[%s3245_s3 + $0x108] sm:$0xff] }
 0x13d   : > { %1438 = vmatmul.f32.gmra.mxu0 %v939_v37 }
 0x141   : > { %v2789_v55 = vpop.permute.xlu2 %1165 }
 0x142   : > { %3311 = vst [vmem:[#allocation15_spill] sm:$0xff] %v2789_v55  ;;  %v988_v55 = vld [vmem:[%s3245_s3 + $0x198] sm:$0xff] }
 0x143   : > { %1554 = vmatmul.f32.gmra.mxu1 %v942_v10  ;;  %v2811_v48 = vpop.permute.xlu0 %1075 }
 0x144   : > { %1215 = vmatmul.f32.gmra.mxu2 %v941_v35  ;;  %1325 = vmatmul.f32.gmra.mxu3 %v940_v53  ;;  %v2779_v49 = vpop.permute.xlu1 %1160 }
 0x145   : > { %1441 = vmatmul.f32.gmra.mxu0 %v941_v35  ;;  %3310 = vst [vmem:[#allocation14_spill] sm:$0xff] %v2779_v49 }
 0x149   : > { %v2801_v18 = vpop.permute.xlu2 %1070 }
 0x14a   : > { %3314 = vst [vmem:[#allocation10_spill] sm:$0xff] %v2801_v18 }
 0x14b   : > { %1557 = vmatmul.f32.gmra.mxu1 %v944_v19  ;;  %v2823_v30 = vpop.permute.xlu0 %1155 }
 0x14c   : > { %1218 = vmatmul.f32.gmra.mxu2 %v943_v6  ;;  %1328 = vmatmul.f32.gmra.mxu3 %v942_v10  ;;  %v2791_v22 = vpop.permute.xlu1 %1065  ;;  %3318 = vst [vmem:[#allocation6_spill] sm:$0xff] %v2823_v30  ;;  %v993_v30 = vld [vmem:[%s3245_s3 + $0x1c0] sm:$0xff] }
 0x14d   : > { %1444 = vmatmul.f32.gmra.mxu0 %v943_v6  ;;  %3312 = vst [vmem:[#allocation12_spill] sm:$0xff] %v2791_v22 }
 0x151   : > { %v2813_v24 = vpop.permute.xlu2 %1150 }
 0x152   : > { %3316 = vst [vmem:[#allocation8_spill] sm:$0xff] %v2813_v24 }
 0x153   : > { %1560 = vmatmul.f32.gmra.mxu1 %v946_v56  ;;  %v2844_v61 = vpop.permute.xlu0 %1060 }
 0x154   : > { %1221 = vmatmul.f32.gmra.mxu2 %v945_v12  ;;  %1331 = vmatmul.f32.gmra.mxu3 %v944_v19  ;;  %v2803_v40 = vpop.permute.xlu1 %1145  ;;  %3323 = vst [vmem:[#allocation3_spill] sm:$0xff] %v2844_v61 }
 0x155   : > { %1447 = vmatmul.f32.gmra.mxu0 %v945_v12  ;;  %3315 = vst [vmem:[#allocation11_spill] sm:$0xff] %v2803_v40  ;;  %v973_v12 = vld [vmem:[%s3245_s3 + $0x120] sm:$0xff] }
 0x159   : > { %v2830_v21 = vpop.permute.xlu2 %1055 }
 0x15a   : > { %3320 = vst [vmem:[#allocation4_spill] sm:$0xff] %v2830_v21 }
 0x15b   : > { %1563 = vmatmul.f32.gmra.mxu1 %v948_v7 }
 0x15c   : > { %1224 = vmatmul.f32.gmra.mxu2 %v947_v63  ;;  %1334 = vmatmul.f32.gmra.mxu3 %v946_v56  ;;  %v2818_v29 = vpop.permute.xlu1 %1050  ;;  %v974_v56 = vld [vmem:[%s3245_s3 + $0x128] sm:$0xff] }
 0x15d   : > { %1450 = vmatmul.f32.gmra.mxu0 %v947_v63  ;;  %3317 = vst [vmem:[#allocation9_spill] sm:$0xff] %v2818_v29  ;;  %v2868_v63 = vpop.permute.xlu0 %1140 }
 0x161   : > { %v2851_v53 = vpop.permute.xlu2 %1135 }
 0x163   : > { %1566 = vmatmul.f32.gmra.mxu1 %v950_v57 }
 0x164   : > { %1227 = vmatmul.f32.gmra.mxu2 %v949_v33  ;;  %1337 = vmatmul.f32.gmra.mxu3 %v948_v7  ;;  %v2837_v43 = vpop.permute.xlu1 %1130 }
 0x165   : > { %1453 = vmatmul.f32.gmra.mxu0 %v949_v33 }
 0x16b   : > { %1569 = vmatmul.f32.gmra.mxu1 %v952_v39 }
 0x16c   : > { %1230 = vmatmul.f32.gmra.mxu2 %v951_v47  ;;  %1340 = vmatmul.f32.gmra.mxu3 %v950_v57  ;;  %v2853_v2 = vpop.permute.xlu1 %1035  ;;  %v2870_v57 = vpop.permute.xlu2 %1040 }
 0x16d   : > { %1456 = vmatmul.f32.gmra.mxu0 %v951_v47  ;;  %3325 = vst [vmem:[#allocation21_spill] sm:$0xff] %v2853_v2 }
 0x16e   : > { %3328 = vst [vmem:[#allocation24_spill] sm:$0xff] %v2870_v57 }
 0x173   : > { %1572 = vmatmul.f32.gmra.mxu1 %v954_v60 }
 0x174   : > { %1233 = vmatmul.f32.gmra.mxu2 %v953_v0  ;;  %1343 = vmatmul.f32.gmra.mxu3 %v952_v39 }
 0x175   : > { %1459 = vmatmul.f32.gmra.mxu0 %v953_v0 }
 0x17b   : > { %1575 = vmatmul.f32.gmra.mxu1 %v956_v4 }
 0x17c   : > { %1236 = vmatmul.f32.gmra.mxu2 %v955_v9  ;;  %1346 = vmatmul.f32.gmra.mxu3 %v954_v60 }
 0x17d   : > { %1462 = vmatmul.f32.gmra.mxu0 %v955_v9  ;;  %v975_v9 = vld [vmem:[%s3245_s3 + $0x130] sm:$0xff] }
 0x183   : > { %1578 = vmatmul.f32.gmra.mxu1 %v958_v31 }
 0x184   : > { %1239 = vmatmul.f32.gmra.mxu2 %v957_v8  ;;  %1349 = vmatmul.f32.gmra.mxu3 %v956_v4  ;;  %v976_v4 = vld [vmem:[%s3245_s3 + $0x138] sm:$0xff] }
 0x185   : > { %1465 = vmatmul.f32.gmra.mxu0 %v957_v8  ;;  %v2885_v8 = vpop.permute.xlu0 %1045 }
 0x186   : > { %3331 = vst [vmem:[#allocation27_spill] sm:$0xff] %v2885_v8 }
 0x18b   : > { %1581 = vmatmul.f32.gmra.mxu1 %v960_v11 }
 0x18c   : > { %1242 = vmatmul.f32.gmra.mxu2 %v959_v50  ;;  %1352 = vmatmul.f32.gmra.mxu3 %v958_v31 }
 0x18d   : > { %1468 = vmatmul.f32.gmra.mxu0 %v959_v50 }
 0x193   : > { %1584 = vmatmul.f32.gmra.mxu1 %v962_v26 }
 0x194   : > { %1245 = vmatmul.f32.gmra.mxu2 %v961_v16  ;;  %1355 = vmatmul.f32.gmra.mxu3 %v960_v11 }
 0x195   : > { %1471 = vmatmul.f32.gmra.mxu0 %v961_v16 }
 0x19b   : > { %1587 = vmatmul.f32.gmra.mxu1 %v964_v38 }
 0x19c   : > { %1248 = vmatmul.f32.gmra.mxu2 %v963_v34  ;;  %1358 = vmatmul.f32.gmra.mxu3 %v962_v26 }
 0x19d   : > { %1474 = vmatmul.f32.gmra.mxu0 %v963_v34  ;;  %v978_v34 = vld [vmem:[%s3245_s3 + $0x148] sm:$0xff] }
 0x1a3   : > { %1590 = vmatmul.f32.gmra.mxu1 %v966_v25 }
 0x1a4   : > { %1251 = vmatmul.f32.gmra.mxu2 %v965_v27  ;;  %1361 = vmatmul.f32.gmra.mxu3 %v964_v38 }
 0x1a5   : > { %1477 = vmatmul.f32.gmra.mxu0 %v965_v27 }
 0x1ab   : > { %1593 = vmatmul.f32.gmra.mxu1 %v968_v51 }
 0x1ac   : > { %1254 = vmatmul.f32.gmra.mxu2 %v967_v58  ;;  %1364 = vmatmul.f32.gmra.mxu3 %v966_v25  ;;  %v977_v25 = vld [vmem:[%s3245_s3 + $0x140] sm:$0xff] }
 0x1ad   : > { %1480 = vmatmul.f32.gmra.mxu0 %v967_v58 }
 0x1b0   : > { %v2825_v36 = vpop.f32.mrf.mxu1 }
 0x1b1   : > { %3319 = vst [vmem:[#allocation7_spill] sm:$0xff] %v2825_v36  ;;  %v994_v36 = vld [vmem:[%s3245_s3 + $0x1c8] sm:$0xff] }
 0x1b2   : > { %v2835_v28 = vpop.f32.mrf.mxu0 }
 0x1b3   : > { %3321 = vst [vmem:[#allocation5_spill] sm:$0xff] %v2835_v28  ;;  %1596 = vmatmul.f32.gmra.mxu1 %v970_v32  ;;  %v996_v28 = vld [vmem:[%s3245_s3 + $0x1d8] sm:$0xff] }
 0x1b4   : > { %1257 = vmatmul.f32.gmra.mxu2 %v969_v20  ;;  %1367 = vmatmul.f32.gmra.mxu3 %v968_v51 }
 0x1b5   : > { %1483 = vmatmul.f32.gmra.mxu0 %v969_v20 }
 0x1b7   : > { %v1210_v23 = vpop.f32.mrf.mxu2 }
 0x1b8   : > { %v2839_v41 = vpop.f32.mrf.mxu1  ;;  %v1211_v37 = vadd.f32 %v1210_v23, %v2853_v2  ;;  %v995_v2 = vld [vmem:[%s3245_s3 + $0x1d0] sm:$0xff] }
 0x1b9   : > { %3322 = vst [vmem:[#allocation2_spill] sm:$0xff] %v2839_v41 }
 0x1ba   : > { %v2849_v46 = vpop.f32.mrf.mxu0 }
 0x1bb   : > { %3324 = vst [vmem:[#allocation20_spill] sm:$0xff] %v2849_v46  ;;  %1599 = vmatmul.f32.gmra.mxu1 %v972_v13 }
 0x1bc   : > { %1260 = vmatmul.f32.gmra.mxu2 %v971_v52  ;;  %1370 = vmatmul.f32.gmra.mxu3 %v970_v32 }
 0x1bd   : > { %1486 = vmatmul.f32.gmra.mxu0 %v971_v52  ;;  %v979_v52 = vld [vmem:[%s3245_s3 + $0x150] sm:$0xff] }
 0x1bf   : > { %v1213_v10 = vpop.f32.mrf.mxu2  ;;  %v1323_v35 = vpop.f32.mrf.mxu3 }
 0x1c0   : > { %v2856_v19 = vadd.f32 %v1323_v35, %v1211_v37  ;;  %v2858_v6 = vpop.f32.mrf.mxu1  ;;  %v1214_v33 = vadd.f32 %v1213_v10, %v2870_v57  ;;  %v998_v57 = vld [vmem:[%s3245_s3 + $0x1e8] sm:$0xff] }
 0x1c1   : > { %3326 = vst [vmem:[#allocation22_spill] sm:$0xff] %v2858_v6 }
 0x1c2   : > { %v2866_v7 = vpop.f32.mrf.mxu0 }
 0x1c3   : > { %3327 = vst [vmem:[#allocation23_spill] sm:$0xff] %v2866_v7  ;;  %1602 = vmatmul.f32.gmra.mxu1 %v974_v56 }
 0x1c4   : > { %1263 = vmatmul.f32.gmra.mxu2 %v973_v12  ;;  %1373 = vmatmul.f32.gmra.mxu3 %v972_v13  ;;  %v980_v13 = vld [vmem:[%s3245_s3 + $0x158] sm:$0xff] }
 0x1c5   : > { %1489 = vmatmul.f32.gmra.mxu0 %v973_v12 }
 0x1c7   : > { %v1216_v39 = vpop.f32.mrf.mxu2  ;;  %v1326_v47 = vpop.f32.mrf.mxu3 }
 0x1c8   : > { %v2873_v60 = vadd.f32 %v1326_v47, %v1214_v33  ;;  %v2875_v0 = vpop.f32.mrf.mxu1  ;;  %v1217_v11 = vadd.f32 %v1216_v39, %v2885_v8  ;;  %v982_v39 = vld [vmem:[%s3245_s3 + $0x168] sm:$0xff]  ;;  %v981_v47 = vld [vmem:[%s3245_s3 + $0x160] sm:$0xff]  ;;  %v3028_v8 = vpop.permute.xlu0 %1125 }
 0x1c9   : > { %3329 = vst [vmem:[#allocation25_spill] sm:$0xff] %v2875_v0 }
 0x1ca   : > { %v2883_v31 = vpop.f32.mrf.mxu0 }
 0x1cb   : > { %3330 = vst [vmem:[#allocation26_spill] sm:$0xff] %v2883_v31  ;;  %1605 = vmatmul.f32.gmra.mxu1 %v976_v4  ;;  %v999_v31 = vld [vmem:[%s3245_s3 + $0x1f0] sm:$0xff] }
 0x1cc   : > { %1266 = vmatmul.f32.gmra.mxu2 %v975_v9  ;;  %1376 = vmatmul.f32.gmra.mxu3 %v974_v56 }
 0x1cd   : > { %1492 = vmatmul.f32.gmra.mxu0 %v975_v9 }
 0x1cf   : > { %v1219_v50 = vpop.f32.mrf.mxu2  ;;  %v1329_v26 = vpop.f32.mrf.mxu3 }
 0x1d0   : > { %v2888_v16 = vadd.f32 %v1329_v26, %v1217_v11  ;;  %v2890_v38 = vpop.f32.mrf.mxu1  ;;  %v1220_v51 = vadd.f32 %v1219_v50, %v2818_v29 }
 0x1d1   : > { %3332 = vst [vmem:[#allocation28_spill] sm:$0xff] %v2890_v38  ;;  %v997_v38 = vld [vmem:[%s3245_s3 + $0x1e0] sm:$0xff] }
 0x1d2   : > { %v2898_v27 = vpop.f32.mrf.mxu0 }
 0x1d3   : > { %3333 = vst [vmem:[#allocation29_spill] sm:$0xff] %v2898_v27  ;;  %1608 = vmatmul.f32.gmra.mxu1 %v978_v34 }
 0x1d4   : > { %1269 = vmatmul.f32.gmra.mxu2 %v977_v25  ;;  %1379 = vmatmul.f32.gmra.mxu3 %v976_v4 }
 0x1d5   : > { %1495 = vmatmul.f32.gmra.mxu0 %v977_v25  ;;  %v984_v25 = vld [vmem:[%s3245_s3 + $0x178] sm:$0xff] }
 0x1d7   : > { %v1222_v58 = vpop.f32.mrf.mxu2  ;;  %v1332_v32 = vpop.f32.mrf.mxu3 }
 0x1d8   : > { %v2901_v20 = vadd.f32 %v1332_v32, %v1220_v51  ;;  %v2903_v23 = vpop.f32.mrf.mxu1  ;;  %v1223_v10 = vadd.f32 %v1222_v58, %v2830_v21  ;;  %v983_v51 = vld [vmem:[%s3245_s3 + $0x170] sm:$0xff] }
 0x1d9   : > { %3334 = vst [vmem:[#allocation30_spill] sm:$0xff] %v2903_v23  ;;  %v1000_v23 = vld [vmem:[%s3245_s3 + $0x1f8] sm:$0xff] }
 0x1da   : > { %v2911_v37 = vpop.f32.mrf.mxu0 }
 0x1db   : > { %3335 = vst [vmem:[#allocation31_spill] sm:$0xff] %v2911_v37  ;;  %1611 = vmatmul.f32.gmra.mxu1 %v980_v13 }
 0x1dc   : > { %1272 = vmatmul.f32.gmra.mxu2 %v979_v52  ;;  %1382 = vmatmul.f32.gmra.mxu3 %v978_v34 }
 0x1dd   : > { %1498 = vmatmul.f32.gmra.mxu0 %v979_v52 }
 0x1df   : > { %v1225_v35 = vpop.f32.mrf.mxu2  ;;  %v1335_v56 = vpop.f32.mrf.mxu3 }
 0x1e0   : > { %v2914_v12 = vadd.f32 %v1335_v56, %v1223_v10  ;;  %v2916_v33 = vpop.f32.mrf.mxu1  ;;  %v1226_v9 = vadd.f32 %v1225_v35, %v2844_v61  ;;  %v986_v56 = vld [vmem:[%s3245_s3 + $0x188] sm:$0xff] }
 0x1e1   : > { %3336 = vst [vmem:[#allocation32_spill] sm:$0xff] %v2916_v33  ;;  %v1116_v33 = vpop.permute.xlu0 %1115 }
 0x1e2   : > { %v2924_v4 = vpop.f32.mrf.mxu0 }
 0x1e3   : > { %3337 = vst [vmem:[#allocation33_spill] sm:$0xff] %v2924_v4  ;;  %1614 = vmatmul.f32.gmra.mxu1 %v982_v39 }
 0x1e4   : > { %1275 = vmatmul.f32.gmra.mxu2 %v981_v47  ;;  %1385 = vmatmul.f32.gmra.mxu3 %v980_v13 }
 0x1e5   : > { %1501 = vmatmul.f32.gmra.mxu0 %v981_v47  ;;  %v985_v47 = vld [vmem:[%s3245_s3 + $0x180] sm:$0xff] }
 0x1e7   : > { %v1228_v11 = vpop.f32.mrf.mxu2  ;;  %v1338_v50 = vpop.f32.mrf.mxu3 }
 0x1e8   : > { %v2927_v26 = vadd.f32 %v1338_v50, %v1226_v9  ;;  %v2929_v34 = vpop.f32.mrf.mxu1  ;;  %v1229_v32 = vadd.f32 %v1228_v11, %v2791_v22 }
 0x1e9   : > { %3338 = vst [vmem:[#allocation34_spill] sm:$0xff] %v2929_v34 }
 0x1ea   : > { %v2937_v58 = vpop.f32.mrf.mxu0 }
 0x1eb   : > { %3339 = vst [vmem:[#allocation35_spill] sm:$0xff] %v2937_v58  ;;  %1617 = vmatmul.f32.gmra.mxu1 %v984_v25  ;;  %v1121_v58 = vpop.permute.xlu2 %1120 }
 0x1ec   : > { %1278 = vmatmul.f32.gmra.mxu2 %v983_v51  ;;  %1388 = vmatmul.f32.gmra.mxu3 %v982_v39 }
 0x1ed   : > { %1504 = vmatmul.f32.gmra.mxu0 %v983_v51 }
 0x1ef   : > { %v1231_v13 = vpop.f32.mrf.mxu2  ;;  %v1341_v52 = vpop.f32.mrf.mxu3 }
 0x1f0   : > { %v2940_v10 = vadd.f32 %v1341_v52, %v1229_v32  ;;  %v1573_v35 = vpop.f32.mrf.mxu1  ;;  %v1232_v11 = vadd.f32 %v1231_v13, %v2801_v18 }
 0x1f2   : > { %v1460_v9 = vpop.f32.mrf.mxu0 }
 0x1f3   : > { %v1461_v50 = vadd.f32 %v1460_v9, %v2811_v48  ;;  %1620 = vmatmul.f32.gmra.mxu1 %v986_v56 }
 0x1f4   : > { %1281 = vmatmul.f32.gmra.mxu2 %v985_v47  ;;  %1391 = vmatmul.f32.gmra.mxu3 %v984_v25  ;;  %v987_v25 = vld [vmem:[%s3245_s3 + $0x190] sm:$0xff] }
 0x1f5   : > { %v2949_v39 = vadd.f32 %v1573_v35, %v1461_v50  ;;  %1507 = vmatmul.f32.gmra.mxu0 %v985_v47  ;;  %v990_v50 = vld [vmem:[%s3245_s3 + $0x1a8] sm:$0xff] }
 0x1f7   : > { %3340 = vst [vmem:[#allocation36_spill] sm:$0xff] %v2949_v39  ;;  %v2952_v51 = vpop.f32.mrf.mxu2  ;;  %v1344_v32 = vpop.f32.mrf.mxu3 }
 0x1f8   : > { %v2954_v52 = vadd.f32 %v1344_v32, %v1232_v11  ;;  %v2956_v49 = vpop.f32.mrf.mxu1  ;;  %v989_v11 = vld [vmem:[%s3245_s3 + $0x1a0] sm:$0xff] }
 0x1f9   : > { %3341 = vst [vmem:[#allocation37_spill] sm:$0xff] %v2956_v49 }
 0x1fa   : > { %v2964_v35 = vpop.f32.mrf.mxu0 }
 0x1fb   : > { %1623 = vmatmul.f32.gmra.mxu1 %v988_v55 }
 0x1fc   : > { %1284 = vmatmul.f32.gmra.mxu2 %v987_v25  ;;  %1394 = vmatmul.f32.gmra.mxu3 %v986_v56 }
 0x1fd   : > { %1510 = vmatmul.f32.gmra.mxu0 %v987_v25 }
 0x1ff   : > { %v2966_v13 = vpop.f32.mrf.mxu2  ;;  %v2968_v47 = vpop.f32.mrf.mxu3 }
 0x200   : > { %v2970_v9 = vpop.f32.mrf.mxu1 }
 0x201   : > { %3342 = vst [vmem:[#allocation38_spill] sm:$0xff] %v2970_v9 }
 0x202   : > { %v2978_v32 = vpop.f32.mrf.mxu0 }
 0x203   : > { %1626 = vmatmul.f32.gmra.mxu1 %v990_v50 }
 0x204   : > { %1287 = vmatmul.f32.gmra.mxu2 %v989_v11  ;;  %1397 = vmatmul.f32.gmra.mxu3 %v988_v55 }
 0x205   : > { %1513 = vmatmul.f32.gmra.mxu0 %v989_v11 }
 0x207   : > { %v2980_v56 = vpop.f32.mrf.mxu2  ;;  %v2982_v25 = vpop.f32.mrf.mxu3 }
 0x208   : > { %v2984_v42 = vpop.f32.mrf.mxu1 }
 0x209   : > { %3343 = vst [vmem:[#allocation39_spill] sm:$0xff] %v2984_v42 }
 0x20a   : > { %v2992_v59 = vpop.f32.mrf.mxu0 }
 0x20b   : > { %1629 = vmatmul.f32.gmra.mxu1 %v992_v15 }
 0x20c   : > { %1290 = vmatmul.f32.gmra.mxu2 %v991_v45  ;;  %1400 = vmatmul.f32.gmra.mxu3 %v990_v50 }
 0x20d   : > { %1516 = vmatmul.f32.gmra.mxu0 %v991_v45 }
 0x20f   : > { %v2994_v55 = vpop.f32.mrf.mxu2  ;;  %v2996_v11 = vpop.f32.mrf.mxu3 }
 0x210   : > { %v2998_v54 = vpop.f32.mrf.mxu1 }
 0x212   : > { %v3006_v41 = vpop.f32.mrf.mxu0 }
 0x213   : > { %1632 = vmatmul.f32.gmra.mxu1 %v994_v36 }
 0x214   : > { %1293 = vmatmul.f32.gmra.mxu2 %v993_v30  ;;  %1403 = vmatmul.f32.gmra.mxu3 %v992_v15 }
 0x215   : > { %1519 = vmatmul.f32.gmra.mxu0 %v993_v30 }
 0x217   : > { %v1246_v45 = vpop.f32.mrf.mxu2  ;;  %v1356_v50 = vpop.f32.mrf.mxu3 }
 0x218   : > { %v3008_v6 = vpop.f32.mrf.mxu1  ;;  %v1247_v18 = vadd.f32 %v1246_v45, %v2739_v3 }
 0x21a   : > { %v3016_v0 = vpop.f32.mrf.mxu0 }
 0x21b   : > { %1635 = vmatmul.f32.gmra.mxu1 %v996_v28 }
 0x21c   : > { %1296 = vmatmul.f32.gmra.mxu2 %v995_v2  ;;  %1406 = vmatmul.f32.gmra.mxu3 %v994_v36 }
 0x21d   : > { %1522 = vmatmul.f32.gmra.mxu0 %v995_v2 }
 0x21f   : > { %v1249_v15 = vpop.f32.mrf.mxu2  ;;  %v1359_v30 = vpop.f32.mrf.mxu3 }
 0x220   : > { %v3018_v46 = vpop.f32.mrf.mxu1  ;;  %v1250_v40 = vadd.f32 %v1249_v15, %v2747_v1 }
 0x222   : > { %v3026_v7 = vpop.f32.mrf.mxu0 }
 0x223   : > { %1638 = vmatmul.f32.gmra.mxu1 %v998_v57 }
 0x224   : > { %1299 = vmatmul.f32.gmra.mxu2 %v997_v38  ;;  %1409 = vmatmul.f32.gmra.mxu3 %v996_v28 }
 0x225   : > { %1525 = vmatmul.f32.gmra.mxu0 %v997_v38 }
 0x227   : > { %v1252_v36 = vpop.f32.mrf.mxu2  ;;  %v1362_v2 = vpop.f32.mrf.mxu3 }
 0x228   : > { %v3030_v24 = vpop.f32.mrf.mxu1  ;;  %v1253_v37 = vadd.f32 %v1252_v36, %v2757_v44  ;;  %v1363_v9 = vadd.f32 %v1362_v2, %v1250_v40  ;;  %v1238_v2 = vadd.f32 %v2966_v13, %v2764_v5 }
 0x22a   : > { %v3038_v29 = vpop.f32.mrf.mxu0 }
 0x22b   : > { %1641 = vmatmul.f32.gmra.mxu1 %v1000_v23 }
 0x22c   : > { %1302 = vmatmul.f32.gmra.mxu2 %v999_v31  ;;  %1412 = vmatmul.f32.gmra.mxu3 %v998_v57 }
 0x22d   : > { %1528 = vmatmul.f32.gmra.mxu0 %v999_v31 }
 0x22f   : > { %v1255_v28 = vpop.f32.mrf.mxu2  ;;  %v1365_v38 = vpop.f32.mrf.mxu3 }
 0x230   : > { %v1597_v39 = vpop.f32.mrf.mxu1  ;;  %v1256_v61 = vadd.f32 %v1255_v28, %v2737_v17  ;;  %v1366_v49 = vadd.f32 %v1365_v38, %v1253_v37  ;;  %v1241_v37 = vadd.f32 %v2980_v56, %v2774_v14  ;;  %v1351_v56 = vadd.f32 %v2982_v25, %v1238_v2 }
 0x231   : > { %v1659_v25 = vmax.f32 %v2954_v52, 0.0 }
 0x232   : > { %v1484_v27 = vpop.f32.mrf.mxu0  ;;  %v1673_v36 = vmax.f32 %v1366_v49, 0.0  ;;  %v1354_v38 = vadd.f32 %v2996_v11, %v1241_v37 }
 0x233   : > { %v1485_v21 = vadd.f32 %v1484_v27, %v1116_v33 }
 0x234   : > { %1415 = vmatmul.f32.gmra.mxu3 %v1000_v23  ;;  %v1665_v13 = vmax.f32 %v1354_v38, 0.0  ;;  %v1479_v38 = vadd.f32 %v3026_v7, %v2757_v44  ;;  %v1473_v44 = vadd.f32 %v3006_v41, %v2739_v3  ;;  %v1467_v41 = vadd.f32 %v2978_v32, %v2774_v14 }
 0x235   : > { %v3040_v34 = vadd.f32 %v1597_v39, %v1485_v21  ;;  %v1244_v21 = vadd.f32 %v2994_v55, %v2784_v62  ;;  %v1360_v39 = vadd.f32 %v1359_v30, %v1247_v18  ;;  %v1663_v30 = vmax.f32 %v1351_v56, 0.0 }
 0x236   : > { %v1592_v7 = vadd.f32 %v3018_v46, %v1479_v38  ;;  %v1586_v46 = vadd.f32 %v2998_v54, %v1473_v44  ;;  %v3358_v44 = vld [vmem:[#allocation36_spill] sm:$0xff] }
 0x237   : > { %v1258_v4 = vpop.f32.mrf.mxu2  ;;  %v1368_v22 = vpop.f32.mrf.mxu3  ;;  %v1669_v55 = vmax.f32 %v1360_v39, 0.0  ;;  %v1657_v39 = vmax.f32 %v2940_v10, 0.0  ;;  %v1482_v10 = vadd.f32 %v3038_v29, %v2737_v17 }
 0x238   : > { %v1369_v57 = vadd.f32 %v1368_v22, %v1256_v61  ;;  %v1600_v31 = vpop.f32.mrf.mxu1  ;;  %v1357_v22 = vadd.f32 %v1356_v50, %v1244_v21  ;;  %v1671_v61 = vmax.f32 %v1363_v9, 0.0  ;;  %v1259_v15 = vadd.f32 %v1258_v4, %v1116_v33 }
 0x239   : > { %v1670_v14 = vmax.f32 %v1586_v46, 0.0 }
 0x23a   : > { %v1675_v42 = vmax.f32 %v1369_v57, 0.0  ;;  %v1487_v27 = vpop.f32.mrf.mxu0  ;;  %v1667_v9 = vmax.f32 %v1357_v22, 0.0 }
 0x23b   : > { %v1488_v23 = vadd.f32 %v1487_v27, %v1121_v58 }
 0x23c   : > { %1725 = vmatpush.msra.mxu2 %v1675_v42  ;;  %v1235_v42 = vadd.f32 %v2952_v51, %v2811_v48 }
 0x23d   : > { %v3048_v28 = vadd.f32 %v1600_v31, %v1488_v23 }
 0x23e   : > { %1726 = vmatpush.msra.mxu2 %v1673_v36  ;;  %v1348_v50 = vadd.f32 %v2968_v47, %v1235_v42 }
 0x23f   : > { %v1261_v45 = vpop.f32.mrf.mxu2  ;;  %v1371_v40 = vpop.f32.mrf.mxu3 }
 0x240   : > { %v3055_v18 = vadd.f32 %v1371_v40, %v1259_v15  ;;  %1727 = vmatpush.msra.mxu2 %v1671_v61  ;;  %v1603_v49 = vpop.f32.mrf.mxu1  ;;  %v1262_v57 = vadd.f32 %v1261_v45, %v1121_v58  ;;  %v1661_v23 = vmax.f32 %v1348_v50, 0.0  ;;  %v1655_v58 = vmax.f32 %v2927_v26, 0.0 }
 0x241   : > { %v1653_v15 = vmax.f32 %v2914_v12, 0.0  ;;  %v1651_v40 = vmax.f32 %v2901_v20, 0.0  ;;  %v1476_v20 = vadd.f32 %v3016_v0, %v2747_v1  ;;  %v3099_v1 = vld [vmem:[%s3247_s5] sm:$0xff] }
 0x242   : > { %v1490_v33 = vpop.f32.mrf.mxu0  ;;  %1728 = vmatpush.msra.mxu2 %v1669_v55  ;;  %v1647_v55 = vmax.f32 %v2873_v60, 0.0 }
 0x243   : > { %v1491_v4 = vadd.f32 %v1490_v33, %v3028_v8 }
 0x244   : > { %1729 = vmatpush.msra.mxu2 %v1667_v9  ;;  %v1674_v9 = vmax.f32 %v1592_v7, 0.0  ;;  %v1662_v7 = vmax.f32 %v3358_v44, 0.0 }
 0x245   : > { %v3062_v11 = vadd.f32 %v1603_v49, %v1491_v4  ;;  %v1595_v49 = vadd.f32 %v3030_v24, %v1482_v10  ;;  %v1470_v24 = vadd.f32 %v2992_v59, %v2784_v62  ;;  %v1464_v59 = vadd.f32 %v2964_v35, %v2764_v5  ;;  %v3344_v62 = vld [vmem:[#allocation39_spill] sm:$0xff]  ;;  %v3346_v5 = vld [vmem:[#allocation10_spill] sm:$0xff] }
 0x246   : > { %1730 = vmatpush.msra.mxu2 %v1665_v13  ;;  %v3347_v35 = vld [vmem:[#allocation35_spill] sm:$0xff] }
 0x247   : > { %v1264_v31 = vpop.f32.mrf.mxu2  ;;  %v1374_v27 = vpop.f32.mrf.mxu3 }
 0x248   : > { %v3064_v48 = vadd.f32 %v1374_v27, %v1262_v57  ;;  %1731 = vmatpush.msra.mxu2 %v1663_v30  ;;  %v1606_v51 = vpop.f32.mrf.mxu1  ;;  %v1265_v37 = vadd.f32 %v1264_v31, %v3028_v8  ;;  %v1649_v8 = vmax.f32 %v2888_v16, 0.0  ;;  %v1645_v16 = vmax.f32 %v2856_v19, 0.0  ;;  %v3345_v57 = vld [vmem:[#allocation38_spill] sm:$0xff]  ;;  %v3121_v27 = vld [vmem:[%s3247_s5 + $0x10] sm:$0x1] }
 0x249   : > { %v1676_v19 = vmax.f32 %v1595_v49, 0.0  ;;  %v1580_v31 = vadd.f32 %v3345_v57, %v1467_v41  ;;  %v3355_v49 = vld [vmem:[#allocation4_spill] sm:$0xff] }
 0x24a   : > { %v1493_v21 = vpop.f32.mrf.mxu0  ;;  %1732 = vmatpush.msra.mxu2 %v1661_v23  ;;  %v1458_v23 = vadd.f32 %v3347_v35, %v3346_v5  ;;  %v3368_v5 = vld [vmem:[#allocation25_spill] sm:$0xff] }
 0x24b   : > { %v1494_v47 = vadd.f32 %v1493_v21, %v2837_v43 }
 0x24c   : > { %1733 = vmatpush.msra.mxu2 %v1659_v25 }
 0x24d   : > { %v3069_v36 = vadd.f32 %v1606_v51, %v1494_v47  ;;  %v3348_v51 = vld [vmem:[#allocation37_spill] sm:$0xff]  ;;  %v3349_v47 = vld [vmem:[#allocation11_spill] sm:$0xff] }
 0x24e   : > { %1734 = vmatpush.msra.mxu2 %v1657_v39 }
 0x24f   : > { %v1267_v22 = vpop.f32.mrf.mxu2  ;;  %v1377_v61 = vpop.f32.mrf.mxu3 }
 0x250   : > { %v3074_v45 = vadd.f32 %v1377_v61, %v1265_v37  ;;  %1735 = vmatpush.msra.mxu2 %v1655_v58  ;;  %v1609_v52 = vpop.f32.mrf.mxu1  ;;  %v1268_v17 = vadd.f32 %v1267_v22, %v2837_v43  ;;  %v1589_v43 = vadd.f32 %v3008_v6, %v1476_v20  ;;  %v1583_v6 = vadd.f32 %v3344_v62, %v1470_v24  ;;  %v3350_v58 = vld [vmem:[#allocation12_spill] sm:$0xff]  ;;  %v3351_v37 = vld [vmem:[#allocation33_spill] sm:$0xff]  ;;  %v3363_v62 = vld [vmem:[#allocation27_spill] sm:$0xff] }
 0x251   : > { %v1455_v22 = vadd.f32 %v3351_v37, %v3350_v58  ;;  %v1666_v61 = vmax.f32 %v1580_v31, 0.0  ;;  %v3366_v31 = vld [vmem:[#allocation24_spill] sm:$0xff]  ;;  %v3371_v37 = vld [vmem:[#allocation22_spill] sm:$0xff] }
 0x252   : > { %v1496_v2 = vpop.f32.mrf.mxu0  ;;  %1736 = vmatpush.msra.mxu2 %v1653_v15  ;;  %v1672_v4 = vmax.f32 %v1589_v43, 0.0  ;;  %v1668_v25 = vmax.f32 %v1583_v6, 0.0  ;;  %v3359_v43 = vld [vmem:[#allocation9_spill] sm:$0xff]  ;;  %v3364_v6 = vld [vmem:[#allocation23_spill] sm:$0xff] }
 0x253   : > { %v1497_v26 = vadd.f32 %v1496_v2, %v2851_v53  ;;  %v3354_v2 = vld [vmem:[#allocation34_spill] sm:$0xff] }
 0x254   : > { %1737 = vmatpush.msra.mxu2 %v1651_v40  ;;  %v3353_v40 = vld [vmem:[#allocation31_spill] sm:$0xff] }
 0x255   : > { %v3083_v12 = vadd.f32 %v1609_v52, %v1497_v26  ;;  %v3352_v52 = vld [vmem:[#allocation3_spill] sm:$0xff]  ;;  %v1571_v26 = vadd.f32 %v3354_v2, %v1458_v23 }
 0x256   : > { %1738 = vmatpush.msra.mxu2 %v1649_v8  ;;  %v1452_v10 = vadd.f32 %v3353_v40, %v3352_v52  ;;  %v3372_v40 = vld [vmem:[#allocation2_spill] sm:$0xff] }
 0x257   : > { %v1270_v29 = vpop.f32.mrf.mxu2  ;;  %v1380_v42 = vpop.f32.mrf.mxu3 }
 0x258   : > { %v3094_v56 = vadd.f32 %v1380_v42, %v1268_v17  ;;  %1739 = vmatpush.msra.mxu2 %v1647_v55  ;;  %v1612_v60 = vpop.f32.mrf.mxu1  ;;  %v1271_v50 = vadd.f32 %v1270_v29, %v2851_v53  ;;  %v1577_v53 = vadd.f32 %v3348_v51, %v1464_v59  ;;  %v3356_v17 = vld [vmem:[#allocation29_spill] sm:$0xff]  ;;  %v3357_v42 = vld [vmem:[#allocation32_spill] sm:$0xff] }
 0x259   : > { %v1449_v29 = vadd.f32 %v3356_v17, %v3355_v49 }
 0x25a   : > { %v1499_v0 = vpop.f32.mrf.mxu0  ;;  %1740 = vmatpush.msra.mxu2 %v1645_v16  ;;  %v1664_v8 = vmax.f32 %v1577_v53, 0.0  ;;  %v1568_v16 = vadd.f32 %v3357_v42, %v1455_v22 }
 0x25b   : > { %v1500_v3 = vadd.f32 %v1499_v0, %v2868_v63  ;;  %1741 = vmatmul.f32.vlgmr.msra.gmra.mxu2 %v3099_v1 }
 0x25c   : > { %1771 = vmatpush.msrb.mxu2 %v1676_v19  ;;  %v3360_v19 = vld [vmem:[#allocation26_spill] sm:$0xff] }
 0x25d   : > { %v3109_v33 = vadd.f32 %v1612_v60, %v1500_v3  ;;  %v1446_v0 = vadd.f32 %v3360_v19, %v3359_v43  ;;  %v3361_v3 = vld [vmem:[#allocation30_spill] sm:$0xff] }
 0x25e   : > { %1772 = vmatpush.msrb.mxu2 %v1674_v9  ;;  %v1565_v41 = vadd.f32 %v3361_v3, %v1452_v10  ;;  %v3362_v9 = vld [vmem:[#allocation8_spill] sm:$0xff] }
 0x25f   : > { %v1273_v13 = vpop.f32.mrf.mxu2  ;;  %v1383_v30 = vpop.f32.mrf.mxu3  ;;  %v1559_v35 = vadd.f32 %v3368_v5, %v1446_v0 }
 0x260   : > { %v3116_v32 = vadd.f32 %v1383_v30, %v1271_v50  ;;  %1773 = vmatpush.msrb.mxu2 %v1672_v4  ;;  %v1615_v54 = vpop.f32.mrf.mxu1  ;;  %v1274_v38 = vadd.f32 %v1273_v13, %v2868_v63  ;;  %v1660_v63 = vmax.f32 %v1571_v26, 0.0  ;;  %v1443_v4 = vadd.f32 %v3364_v6, %v3363_v62  ;;  %v3365_v50 = vld [vmem:[#allocation28_spill] sm:$0xff] }
 0x261   : > { %v1562_v13 = vadd.f32 %v3365_v50, %v1449_v29  ;;  %v1658_v30 = vmax.f32 %v1568_v16, 0.0  ;;  %v1656_v23 = vmax.f32 %v1565_v41, 0.0  ;;  %v1652_v2 = vmax.f32 %v1559_v35, 0.0 }
 0x262   : > { %v1502_v21 = vpop.f32.mrf.mxu0  ;;  %1774 = vmatpush.msrb.mxu2 %v1670_v14  ;;  %v3367_v14 = vld [vmem:[#allocation20_spill] sm:$0xff]  ;;  %v1556_v22 = vadd.f32 %v3371_v37, %v1443_v4  ;;  %v3377_v37 = vld [vmem:[#allocation17_spill] sm:$0xff] }
 0x263   : > { %v1503_v39 = vadd.f32 %v1502_v21, %v3349_v47  ;;  %1744 = vmatmul.f32.gmra.mxu2 %v3121_v27  ;;  %v3369_v21 = vld [vmem:[#allocation21_spill] sm:$0xff] }
 0x264   : > { %1775 = vmatpush.msrb.mxu2 %v1668_v25  ;;  %v1650_v49 = vmax.f32 %v1556_v22, 0.0 }
 0x265   : > { %v3130_v15 = vadd.f32 %v1615_v54, %v1503_v39  ;;  %v1440_v54 = vadd.f32 %v3367_v14, %v3366_v31  ;;  %v3370_v39 = vld [vmem:[#allocation5_spill] sm:$0xff] }
 0x266   : > { %1776 = vmatpush.msrb.mxu2 %v1666_v61  ;;  %v1437_v58 = vadd.f32 %v3370_v39, %v3369_v21  ;;  %v1654_v61 = vmax.f32 %v1562_v13, 0.0  ;;  %v3376_v21 = vld [vmem:[#allocation18_spill] sm:$0xff] }
 0x267   : > { %v1276_v55 = vpop.f32.mrf.mxu2  ;;  %v1386_v20 = vpop.f32.mrf.mxu3  ;;  %v1553_v10 = vadd.f32 %v3372_v40, %v1440_v54 }
 0x268   : > { %v3140_v60 = vadd.f32 %v1386_v20, %v1274_v38  ;;  %1777 = vmatpush.msrb.mxu2 %v1664_v8  ;;  %v1618_v24 = vpop.f32.mrf.mxu1  ;;  %v1277_v51 = vadd.f32 %v1276_v55, %v3349_v47  ;;  %v3373_v38 = vld [vmem:[#allocation6_spill] sm:$0xff]  ;;  %v3374_v55 = vld [vmem:[#allocation7_spill] sm:$0xff] }
 0x269   : > { %v1550_v20 = vadd.f32 %v3374_v55, %v1437_v58  ;;  %v1648_v29 = vmax.f32 %v1553_v10, 0.0  ;;  %v3378_v10 = vld [vmem:[#allocation16_spill] sm:$0xff] }
 0x26a   : > { %v1505_v46 = vpop.f32.mrf.mxu0  ;;  %1778 = vmatpush.msrb.mxu2 %v1662_v7 }
 0x26b   : > { %v1506_v59 = vadd.f32 %v1505_v46, %v3362_v9  ;;  %v1646_v7 = vmax.f32 %v1550_v20, 0.0 }
 0x26c   : > { %1779 = vmatpush.msrb.mxu2 %v1660_v63 }
 0x26d   : > { %v3149_v57 = vadd.f32 %v1618_v24, %v1506_v59 }
 0x26e   : > { %1780 = vmatpush.msrb.mxu2 %v1658_v30 }
 0x26f   : > { %v1279_v53 = vpop.f32.mrf.mxu2  ;;  %v1389_v25 = vpop.f32.mrf.mxu3 }
 0x270   : > { %v3158_v52 = vadd.f32 %v1389_v25, %v1277_v51  ;;  %1781 = vmatpush.msrb.mxu2 %v1656_v23  ;;  %v1621_v8 = vpop.f32.mrf.mxu1  ;;  %v1280_v42 = vadd.f32 %v1279_v53, %v3362_v9  ;;  %v3375_v53 = vld [vmem:[#allocation19_spill] sm:$0xff] }
 0x272   : > { %v1508_v26 = vpop.f32.mrf.mxu0  ;;  %1782 = vmatpush.msrb.mxu2 %v1654_v61 }
 0x273   : > { %v1509_v47 = vadd.f32 %v1508_v26, %v3373_v38 }
 0x274   : > { %1783 = vmatpush.msrb.mxu2 %v1652_v2 }
 0x275   : > { %v3163_v17 = vadd.f32 %v1621_v8, %v1509_v47  ;;  %v3379_v47 = vld [vmem:[#allocation13_spill] sm:$0xff] }
 0x276   : > { %1784 = vmatpush.msrb.mxu2 %v1650_v49 }
 0x277   : > { %v1282_v16 = vpop.f32.mrf.mxu2  ;;  %v1392_v44 = vpop.f32.mrf.mxu3 }
 0x278   : > { %v3166_v24 = vadd.f32 %v1392_v44, %v1280_v42  ;;  %1785 = vmatpush.msrb.mxu2 %v1648_v29  ;;  %v1283_v43 = vadd.f32 %v1282_v16, %v3373_v38  ;;  %v3173_v62 = vpop.f32.mrf.mxu1  ;;  %v3380_v29 = vld [vmem:[#allocation15_spill] sm:$0xff] }
 0x27a   : > { %1786 = vmatpush.msrb.mxu2 %v1646_v7  ;;  %v3171_v59 = vpop.f32.mrf.mxu0 }
 0x27b   : > { %1787 = vmatmul.f32.vlgmr.msrb.gmra.mxu2 %v3099_v1 }
 0x27f   : > { %v1285_v19 = vpop.f32.mrf.mxu2  ;;  %v1395_v0 = vpop.f32.mrf.mxu3 }
 0x280   : > { %v1396_v3 = vadd.f32 %v1395_v0, %v1283_v43  ;;  %v3177_v30 = vpop.f32.mrf.mxu1  ;;  %v3381_v43 = vld [vmem:[#allocation14_spill] sm:$0xff] }
 0x281   : > { %v1286_v0 = vadd.f32 %v1285_v19, %v3381_v43  ;;  %v1687_v19 = vmax.f32 %v3140_v60, 0.0 }
 0x282   : > { %v3175_v50 = vpop.f32.mrf.mxu0 }
 0x283   : > { %1790 = vmatmul.f32.gmra.mxu2 %v3121_v27 }
 0x287   : > { %v1288_v41 = vpop.f32.mrf.mxu2  ;;  %v1398_v63 = vpop.f32.mrf.mxu3 }
 0x288   : > { %v3181_v54 = vpop.f32.mrf.mxu1  ;;  %v1289_v42 = vadd.f32 %v1288_v41, %v3380_v29 }
 0x28a   : > { %v3179_v31 = vpop.f32.mrf.mxu0 }
 0x28f   : > { %v1291_v46 = vpop.f32.mrf.mxu2  ;;  %v1401_v9 = vpop.f32.mrf.mxu3 }
 0x290   : > { %v3183_v51 = vpop.f32.mrf.mxu1  ;;  %v1292_v55 = vadd.f32 %v1291_v46, %v3379_v47 }
 0x292   : > { %v1520_v35 = vpop.f32.mrf.mxu0 }
 0x297   : > { %v1294_v6 = vpop.f32.mrf.mxu2  ;;  %v1404_v4 = vpop.f32.mrf.mxu3 }
 0x298   : > { %v1295_v2 = vadd.f32 %v1294_v6, %v3378_v10  ;;  %v1405_v16 = vadd.f32 %v1404_v4, %v1292_v55  ;;  %v1636_v7 = vpop.f32.mrf.mxu1  ;;  %v1399_v6 = vadd.f32 %v1398_v63, %v1286_v0  ;;  %v1691_v4 = vmax.f32 %v3166_v24, 0.0 }
 0x299   : > { %v1690_v55 = vmax.f32 %v3130_v15, 0.0  ;;  %v1718_v15 = vpop.permute.xlu1 %1717 }
 0x29a   : > { %v1523_v38 = vpop.f32.mrf.mxu0 }
 0x29b   : > { %v1524_v60 = vadd.f32 %v1523_v38, %v3377_v37  ;;  %v1712_v38 = vld [vmem:[%s3247_s5 + $0x18] sm:$0x1] }
 0x29f   : > { %v1297_v1 = vpop.f32.mrf.mxu2  ;;  %v1407_v13 = vpop.f32.mrf.mxu3 }
 0x2a0   : > { %v1298_v22 = vadd.f32 %v1297_v1, %v3377_v37  ;;  %v1408_v20 = vadd.f32 %v1407_v13, %v1295_v2  ;;  %v1402_v1 = vadd.f32 %v1401_v9, %v1289_v42  ;;  %v1695_v13 = vmax.f32 %v1399_v6, 0.0  ;;  %v1639_v41 = vpop.f32.mrf.mxu1 }
 0x2a1   : > { %v1685_v9 = vmax.f32 %v3116_v32, 0.0  ;;  %v1677_v32 = vmax.f32 %v3055_v18, 0.0 }
 0x2a2   : > { %v1526_v46 = vpop.f32.mrf.mxu0 }
 0x2a3   : > { %v1527_v24 = vadd.f32 %v1526_v46, %v3375_v53 }
 0x2a7   : > { %v1410_v14 = vpop.f32.mrf.mxu3  ;;  %v1300_v27 = vpop.f32.mrf.mxu2 }
 0x2a8   : > { %v1301_v25 = vadd.f32 %v1300_v27, %v3375_v53  ;;  %v1411_v26 = vadd.f32 %v1410_v14, %v1298_v22  ;;  %v1701_v27 = vmax.f32 %v1408_v20, 0.0  ;;  %v1699_v14 = vmax.f32 %v1405_v16, 0.0 }
 0x2a9   : > { %v1681_v22 = vmax.f32 %v3074_v45, 0.0  ;;  %v1518_v45 = vadd.f32 %v3179_v31, %v3379_v47  ;;  %v1637_v53 = vadd.f32 %v1636_v7, %v1524_v60  ;;  %v1688_v20 = vmax.f32 %v3109_v33, 0.0 }
 0x2aa   : > { %v1703_v44 = vmax.f32 %v1411_v26, 0.0  ;;  %v1529_v63 = vpop.f32.mrf.mxu0 }
 0x2ab   : > { %v1704_v26 = vmax.f32 %v1637_v53, 0.0 }
 0x2af   : > { %v1413_v5 = vpop.f32.mrf.mxu3  ;;  %v1303_v23 = vpop.f32.mrf.mxu2 }
 0x2b0   : > { %v1304_v39 = vadd.f32 %v1303_v23, %v3376_v21  ;;  %v1414_v61 = vadd.f32 %v1413_v5, %v1301_v25  ;;  %v1697_v5 = vmax.f32 %v1402_v1, 0.0  ;;  %v1693_v23 = vmax.f32 %v1396_v3, 0.0  ;;  %v1642_v3 = vpop.f32.mrf.mxu1 }
 0x2b1   : > { %v1689_v25 = vmax.f32 %v3158_v52, 0.0  ;;  %v1679_v52 = vmax.f32 %v3064_v48, 0.0  ;;  %v1515_v48 = vadd.f32 %v3175_v50, %v3380_v29  ;;  %v1682_v29 = vmax.f32 %v3062_v11, 0.0 }
 0x2b2   : > { %v1705_v49 = vmax.f32 %v1414_v61, 0.0 }
 0x2b3   : > { %v1628_v31 = vadd.f32 %v3177_v30, %v1515_v48  ;;  %v1692_v30 = vmax.f32 %v3149_v57, 0.0  ;;  %v1678_v57 = vmax.f32 %v3040_v34, 0.0 }
 0x2b5   : > { %v1698_v47 = vmax.f32 %v1628_v31, 0.0 }
 0x2b7   : > { %v1416_v58 = vpop.f32.mrf.mxu3 }
 0x2b8   : > { %v1417_v40 = vadd.f32 %v1416_v58, %v1304_v39  ;;  %v1683_v39 = vmax.f32 %v3094_v56, 0.0  ;;  %v1530_v58 = vadd.f32 %v1529_v63, %v3376_v21  ;;  %v1640_v56 = vadd.f32 %v1639_v41, %v1527_v24  ;;  %v1710_v21 = vld [vmem:[%s3247_s5 + $0x8] sm:$0xff] }
 0x2ba   : > { %v1707_v8 = vmax.f32 %v1417_v40, 0.0  ;;  %v1643_v61 = vadd.f32 %v1642_v3, %v1530_v58  ;;  %v1521_v40 = vadd.f32 %v1520_v35, %v3378_v10  ;;  %v1706_v37 = vmax.f32 %v1640_v56, 0.0 }
 0x2bb   : > { %v1512_v35 = vadd.f32 %v3171_v59, %v3381_v43  ;;  %v1631_v10 = vadd.f32 %v3181_v54, %v1518_v45  ;;  %v1694_v54 = vmax.f32 %v3163_v17, 0.0  ;;  %v1680_v17 = vmax.f32 %v3048_v28, 0.0  ;;  %v1723_v28 = vpop.permute.xlu2 %1722 }
 0x2bc   : > { %1748 = vmatpush.msra.mxu3 %v1707_v8  ;;  %v1708_v2 = vmax.f32 %v1643_v61, 0.0  ;;  %v1634_v18 = vadd.f32 %v3183_v51, %v1521_v40 }
 0x2bd   : > { %v1625_v50 = vadd.f32 %v3173_v62, %v1512_v35  ;;  %v1700_v51 = vmax.f32 %v1631_v10, 0.0  ;;  %v1686_v62 = vmax.f32 %v3083_v12, 0.0 }
 0x2be   : > { %1749 = vmatpush.msra.mxu3 %v1705_v49  ;;  %v1702_v8 = vmax.f32 %v1634_v18, 0.0  ;;  %v1684_v49 = vmax.f32 %v3069_v36, 0.0 }
 0x2bf   : > { %v1696_v59 = vmax.f32 %v1625_v50, 0.0 }
 0x2c0   : > { %1750 = vmatpush.msra.mxu3 %v1703_v44 }
 0x2c2   : > { %1751 = vmatpush.msra.mxu3 %v1701_v27 }
 0x2c4   : > { %1752 = vmatpush.msra.mxu3 %v1699_v14 }
 0x2c6   : > { %1753 = vmatpush.msra.mxu3 %v1697_v5 }
 0x2c8   : > { %1754 = vmatpush.msra.mxu3 %v1695_v13 }
 0x2ca   : > { %1755 = vmatpush.msra.mxu3 %v1693_v23 }
 0x2cc   : > { %1756 = vmatpush.msra.mxu3 %v1691_v4 }
 0x2ce   : > { %1757 = vmatpush.msra.mxu3 %v1689_v25 }
 0x2d0   : > { %1758 = vmatpush.msra.mxu3 %v1687_v19 }
 0x2d2   : > { %1759 = vmatpush.msra.mxu3 %v1685_v9 }
 0x2d4   : > { %1760 = vmatpush.msra.mxu3 %v1683_v39 }
 0x2d6   : > { %1761 = vmatpush.msra.mxu3 %v1681_v22 }
 0x2d8   : > { %1762 = vmatpush.msra.mxu3 %v1679_v52 }
 0x2da   : > { %1763 = vmatpush.msra.mxu3 %v1677_v32 }
 0x2db   : > { %1764 = vmatmul.f32.vlgmr.msra.gmra.mxu3 %v1710_v21 }
 0x2dc   : > { %1794 = vmatpush.msrb.mxu3 %v1708_v2 }
 0x2de   : > { %1795 = vmatpush.msrb.mxu3 %v1706_v37  ;;  %v1742_v33 = vpop.f32.mrf.mxu2 }
 0x2df   : > { %v1743_v12 = vadd.f32 %v1742_v33, %v1718_v15 }
 0x2e0   : > { %1796 = vmatpush.msrb.mxu3 %v1704_v26 }
 0x2e2   : > { %1797 = vmatpush.msrb.mxu3 %v1702_v8 }
 0x2e3   : > { %1767 = vmatmul.f32.gmra.mxu3 %v1712_v38 }
 0x2e4   : > { %1798 = vmatpush.msrb.mxu3 %v1700_v51 }
 0x2e6   : > { %1799 = vmatpush.msrb.mxu3 %v1698_v47  ;;  %v1745_v42 = vpop.f32.mrf.mxu2 }
 0x2e7   : > { %v1746_v16 = vadd.f32 %v1745_v42, %v1723_v28 }
 0x2e8   : > { %1800 = vmatpush.msrb.mxu3 %v1696_v59 }
 0x2ea   : > { %1801 = vmatpush.msrb.mxu3 %v1694_v54 }
 0x2ec   : > { %1802 = vmatpush.msrb.mxu3 %v1692_v30 }
 0x2ee   : > { %1803 = vmatpush.msrb.mxu3 %v1690_v55 }
 0x2f0   : > { %1804 = vmatpush.msrb.mxu3 %v1688_v20 }
 0x2f2   : > { %1805 = vmatpush.msrb.mxu3 %v1686_v62 }
 0x2f4   : > { %1806 = vmatpush.msrb.mxu3 %v1684_v49 }
 0x2f6   : > { %1807 = vmatpush.msrb.mxu3 %v1682_v29 }
 0x2f8   : > { %1808 = vmatpush.msrb.mxu3 %v1680_v17 }
 0x2fa   : > { %1809 = vmatpush.msrb.mxu3 %v1678_v57 }
 0x2fb   : > { %1810 = vmatmul.f32.vlgmr.msrb.gmra.mxu3 %v1710_v21 }
 0x2fe   : > { %v1788_v7 = vpop.f32.mrf.mxu2 }
 0x2ff   : > { %v1789_v43 = vadd.f32 %v1788_v7, %v1718_v15 }
 0x303   : > { %1813 = vmatmul.f32.gmra.mxu3 %v1712_v38 }
 0x306   : > { %v1791_v27 = vpop.f32.mrf.mxu2 }
 0x307   : > { %v1792_v6 = vadd.f32 %v1791_v27, %v1723_v28 }
 0x35e   : > { %v1765_v36 = vpop.f32.mrf.mxu3 }
 0x35f   : > { %v1766_v11 = vadd.f32 %v1765_v36, %v1743_v12 }
 0x361   : > { %1817 = vst [vmem:[%s316_s21] sm:$0xff] %v1766_v11 }
 0x366   : > { %v1768_v44 = vpop.f32.mrf.mxu3 }
 0x367   : > { %v1769_v34 = vadd.f32 %v1768_v44, %v1746_v16 }
 0x369   : > { %1819 = vst [vmem:[%s316_s21 + $0x10] sm:$0x1] %v1769_v34 }
 0x37e   : > { %v1811_v0 = vpop.f32.mrf.mxu3 }
 0x37f   : > { %v1812_v1 = vadd.f32 %v1811_v0, %v1789_v43 }
 0x381   : > { %1818 = vst [vmem:[%s316_s21 + $0x8] sm:$0xff] %v1812_v1 }
 0x386   : > { %v1814_v14 = vpop.f32.mrf.mxu3 }
 0x387   : > { %v1815_v5 = vadd.f32 %v1814_v14, %v1792_v6 }
 0x389   : > { %1820 = vst [vmem:[%s316_s21 + $0x18] sm:$0x1] %v1815_v5 }
 0x38a PF: > { %s17_s26 = sadd.s32 1, %s2043_s26   ;;  %s3382_s24 = smov %s2039_s25 }
 0x38b   : > { %p14_p5 = scmp.ge.s32.totalorder %s17_s26, 4   ;;  %s3383_s25 = smov %s3385_s27 }
 0x38d   :  { %16 = sbr.rel (!%p14_p5) target bundleno = 2 (0x2), region = 78 }

</bundles_post_ra>
